<compile_context>
chip_gen: v6e
topology: v6e:2x2x1
jax: 0.10.0
libtpu: 0.0.40
codegen_flags: <defaults>
</compile_context>

<pallas_src>
import functools

import jax
import jax.numpy as jnp
from jax.experimental import pallas as pl
from jax.experimental.pallas import tpu as pltpu


# ----------------------------------------------------------------------------
# Hardware-aware sizing helpers
# ----------------------------------------------------------------------------
@functools.lru_cache(maxsize=1)
def _vmem_capacity_bytes():
    """Physical per-core VMEM capacity, generation-aware with safe fallbacks."""
    try:
        return int(pltpu.get_tpu_info().vmem_capacity_bytes)
    except Exception:
        pass
    try:
        kind = jax.devices()[0].device_kind.lower()
        if "v7" in kind:
            return 64 * 1024 * 1024
    except Exception:
        pass
    return 128 * 1024 * 1024      # v5e / v6e


@functools.lru_cache(maxsize=1)
def _vmem_limit_bytes():
    # Leave headroom for Mosaic internal scratch / spill traffic.
    return int(_vmem_capacity_bytes() * 3 // 4)


def _round_up(n, m):
    return ((n + m - 1) // m) * m


def _choose_time_block(T, Bb, Din, H, in_bytes, w_bytes, out_bytes, budget,
                       cap=64):
    """Largest divisor of T (<= cap) whose per-grid-step VMEM footprint fits."""
    G = 4 * H

    def vmem_cost(tb):
        x_blk = 2 * tb * Bb * Din * in_bytes        # double-buffered input block
        out_blk = 2 * tb * Bb * H * out_bytes       # double-buffered output block
        gi = tb * Bb * G * 4                        # f32 gi scratch
        # TODO(synk): single-buffer W_ih/W_hh (pipeline_mode=pl.Buffered(1)) once
        # verified on v7x; budgeted at 2 buffers here to stay conservative.
        weights = 2 * (Din * G + H * G) * w_bytes + 2 * G * 4
        state = 2 * Bb * H * 4                      # persistent h / c scratch
        return x_blk + out_blk + gi + weights + state

    best = 1
    for tb in range(1, min(T, cap) + 1):
        if T % tb == 0 and vmem_cost(tb) <= budget:
            best = tb
    return best


def _choose_col_block(F, cap=4096):
    """Column (output-feature) tile for the classifier, lane-dense when tiled."""
    if F <= cap:
        return F
    for tn in range(cap, 127, -128):
        if F % tn == 0:
            return tn
    return F


# ----------------------------------------------------------------------------
# Kernel bodies
# ----------------------------------------------------------------------------
def _lstm_cell(gates, c_prev, hidden):
    """PyTorch LSTM cell update from pre-activations (gate order i, f, g, o)."""
    # TODO(synk): for hidden < 128 these are sub-lane-tile slices (masked lane
    # selects); pad H to 128 or use an interleaved gate layout for large runs.
    i = jax.nn.sigmoid(gates[:, 0 * hidden:1 * hidden])
    f = jax.nn.sigmoid(gates[:, 1 * hidden:2 * hidden])
    g = jnp.tanh(gates[:, 2 * hidden:3 * hidden])
    o = jax.nn.sigmoid(gates[:, 3 * hidden:4 * hidden])
    c_new = f * c_prev + i * g
    h_new = o * jnp.tanh(c_new)
    return h_new, c_new


def _project_block(x_ref, wih_ref, bias_ref, gi_scr, tb):
    """Fused input projection for one time block: gi = x @ W_ih^T + bias (f32)."""
    b = x_ref.shape[1]
    din = x_ref.shape[2]
    g = wih_ref.shape[1]
    gi = (
        jnp.dot(x_ref[...].reshape(tb * b, din), wih_ref[...],
                preferred_element_type=jnp.float32)
        + bias_ref[...]
    )
    gi_scr[...] = gi.reshape(tb, b, g)


def _lstm_layer_kernel(x_ref, wih_ref, whh_ref, bias_ref, hseq_ref,
                       h_scr, c_scr, gi_scr, *, tb, hidden):
    """Intermediate layer.  Grid = (batch_blocks, T // Tb); time axis sequential.

    x_ref:    (Tb, Bb, Din)  layer input (compute dtype)
    wih_ref:  (Din, 4H)      W_ih^T
    whh_ref:  (H, 4H)        W_hh^T
    bias_ref: (1, 4H)        b_ih + b_hh (f32)
    hseq_ref: (Tb, Bb, H)    hidden sequence output (compute dtype)
    h_scr/c_scr: (Bb, H)     persistent f32 hidden / cell state
    gi_scr:   (Tb, Bb, 4H)   f32 gate pre-activations for this block
    """
    ti = pl.program_id(1)

    @pl.when(ti == 0)
    def _():
        h_scr[...] = jnp.zeros_like(h_scr)
        c_scr[...] = jnp.zeros_like(c_scr)

    # Fused input projection (no sequential dependence; hides under recurrence).
    _project_block(x_ref, wih_ref, bias_ref, gi_scr, tb)

    w_hh = whh_ref[...]

    def step(t, carry):
        h_prev, c_prev = carry
        gates = gi_scr[t] + jnp.dot(h_prev.astype(w_hh.dtype), w_hh,
                                    preferred_element_type=jnp.float32)
        h_new, c_new = _lstm_cell(gates, c_prev, hidden)
        hseq_ref[t] = h_new.astype(hseq_ref.dtype)
        return h_new, c_new

    h_fin, c_fin = jax.lax.fori_loop(0, tb, step, (h_scr[...], c_scr[...]),
                                     unroll=min(tb, 8))
    h_scr[...] = h_fin
    c_scr[...] = c_fin


def _lstm_last_kernel(x_ref, wih_ref, whh_ref, bias_ref, hlast_ref,
                      h_scr, c_scr, gi_scr, *, tb, hidden):
    """Last layer: identical recurrence, but only the final hidden state (Bb, H)
    is written (no (T,B,H) HBM writeback).  The output block index is constant
    along the time axis, which is correct only because the time axis is marked
    "arbitrary" (strictly sequential per core)."""
    ti = pl.program_id(1)

    @pl.when(ti == 0)
    def _():
        h_scr[...] = jnp.zeros_like(h_scr)
        c_scr[...] = jnp.zeros_like(c_scr)

    _project_block(x_ref, wih_ref, bias_ref, gi_scr, tb)

    w_hh = whh_ref[...]

    def step(t, carry):
        h_prev, c_prev = carry
        gates = gi_scr[t] + jnp.dot(h_prev.astype(w_hh.dtype), w_hh,
                                    preferred_element_type=jnp.float32)
        return _lstm_cell(gates, c_prev, hidden)

    h_fin, c_fin = jax.lax.fori_loop(0, tb, step, (h_scr[...], c_scr[...]),
                                     unroll=min(tb, 8))
    h_scr[...] = h_fin
    c_scr[...] = c_fin

    @pl.when(ti == pl.num_programs(1) - 1)
    def _():
        hlast_ref[...] = h_fin.astype(hlast_ref.dtype)


def _classifier_kernel(h_ref, w_ref, b_ref, o_ref):
    """o = h @ W_cls^T + b_cls.   h:(B,H)  w:(H,TN)  b:(1,TN)  o:(B,TN)."""
    o_ref[...] = (
        jnp.dot(h_ref[...], w_ref[...], preferred_element_type=jnp.float32)
        + b_ref[...]
    )


# ----------------------------------------------------------------------------
# pallas_call wrappers
# ----------------------------------------------------------------------------
def lstm_layer(x_seq, wih_t, whh_t, bias, *, last, batch_blocks, vmem_limit,
               out_dtype):
    """One LSTM layer with the input projection fused into the recurrence.

    x_seq: (T, B_pad, Din) time-major, compute dtype.
    Returns (T, B_pad, H) hidden sequence (intermediate layers) or
    (B_pad, H) final hidden state (last layer), in `out_dtype`.
    """
    T, B, Din = x_seq.shape
    H, G = whh_t.shape
    NB = batch_blocks
    Bb = B // NB

    budget = int(vmem_limit * 0.85)
    Tb = _choose_time_block(
        T, Bb, Din, H,
        in_bytes=x_seq.dtype.itemsize,
        w_bytes=whh_t.dtype.itemsize,
        out_bytes=jnp.dtype(out_dtype).itemsize,
        budget=budget)

    kernel = functools.partial(
        _lstm_last_kernel if last else _lstm_layer_kernel, tb=Tb, hidden=H)

    in_specs = [
        pl.BlockSpec((Tb, Bb, Din), lambda nb, ti: (ti, nb, 0)),
        pl.BlockSpec((Din, G), lambda nb, ti: (0, 0)),
        pl.BlockSpec((H, G), lambda nb, ti: (0, 0)),
        pl.BlockSpec((1, G), lambda nb, ti: (0, 0)),
    ]
    scratch = [pltpu.VMEM((Bb, H), jnp.float32),
               pltpu.VMEM((Bb, H), jnp.float32),
               pltpu.VMEM((Tb, Bb, G), jnp.float32)]

    if last:
        out_shape = jax.ShapeDtypeStruct((B, H), out_dtype)
        out_specs = pl.BlockSpec((Bb, H), lambda nb, ti: (nb, 0))
    else:
        out_shape = jax.ShapeDtypeStruct((T, B, H), out_dtype)
        out_specs = pl.BlockSpec((Tb, Bb, H), lambda nb, ti: (ti, nb, 0))

    grid_spec = pltpu.PrefetchScalarGridSpec(
        num_scalar_prefetch=0,
        grid=(NB, T // Tb),
        in_specs=in_specs,
        out_specs=out_specs,
        scratch_shapes=scratch)

    return pl.pallas_call(
        kernel,
        out_shape=out_shape,
        grid_spec=grid_spec,
        compiler_params=pltpu.CompilerParams(
            # Batch blocks are independent (parallel across TensorCores on
            # v7x); the time axis carries the recurrence and must stay
            # sequential ("arbitrary").
            dimension_semantics=("parallel", "arbitrary"),
            vmem_limit_bytes=vmem_limit),
    )(x_seq, wih_t, whh_t, bias)


def classifier(h, wcls_t, bcls, vmem_limit):
    """(B, H) @ (H, F) + (1, F) -> (B, F) f32, tiled over F."""
    B, H = h.shape
    F = wcls_t.shape[1]
    TN = _choose_col_block(F)
    grid_spec = pltpu.PrefetchScalarGridSpec(
        num_scalar_prefetch=0,
        grid=(F // TN,),
        in_specs=[
            pl.BlockSpec((B, H), lambda j: (0, 0)),
            pl.BlockSpec((H, TN), lambda j: (0, j)),
            pl.BlockSpec((1, TN), lambda j: (0, j)),
        ],
        out_specs=pl.BlockSpec((B, TN), lambda j: (0, j)),
    )
    return pl.pallas_call(
        _classifier_kernel,
        out_shape=jax.ShapeDtypeStruct((B, F), jnp.float32),
        grid_spec=grid_spec,
        compiler_params=pltpu.CompilerParams(
            dimension_semantics=("parallel",),
            vmem_limit_bytes=vmem_limit),
    )(h, wcls_t, bcls)


# ----------------------------------------------------------------------------
# Parameter prep + forward
# ----------------------------------------------------------------------------
def prepare_params(params, compute_dtype=jnp.bfloat16):
    """One-time weight prep: transpose, cast to compute dtype, fold biases."""
    layers = []
    for layer in params["lstm_layers"]:
        layers.append({
            "wih_t": jnp.asarray(layer["w_ih"].T, compute_dtype),   # (in, 4H)
            "whh_t": jnp.asarray(layer["w_hh"].T, compute_dtype),   # (H, 4H)
            # b_ih and b_hh add to the same pre-activation -> fold once (f32).
            "bias": (layer["b_ih"] + layer["b_hh"]).astype(jnp.float32)[None, :],
        })
    return {
        "layers": layers,
        "wcls_t": jnp.asarray(params["w_cls"].T, compute_dtype),    # (H, F)
        "bcls": params["b_cls"].astype(jnp.float32)[None, :],
    }


@functools.partial(jax.jit, static_argnames=("batch_size", "batch_blocks"))
def lstm_model_forward(x, prep, batch_size, batch_blocks=1):
    """Pallas equivalent of LSTM.forward.  x: (B, T, D) batch-first.

    batch_blocks: set to 2 on v7x (2 TensorCores per chip) when B_pad/2 >= 16
    to split the recurrence across cores.  Default 1 (v5e/v6e single TC).
    """
    B, T, _ = x.shape
    cdtype = prep["wcls_t"].dtype
    # Pad batch to the sublane packing of the compute dtype (16 for bf16,
    # 8 for f32) so MXU LHS tiles of the recurrence are fully packed.
    sub = 16 if jnp.dtype(cdtype).itemsize == 2 else 8
    B_pad = _round_up(B, sub)
    vmem_limit = _vmem_limit_bytes()

    nb = batch_blocks
    if nb < 1 or B_pad % nb != 0 or (B_pad // nb) % sub != 0:
        nb = 1

    # Single transpose + cast of the (small) raw input; all inter-layer data is
    # produced time-major in the compute dtype by the kernels (no further
    # transposes or cast passes).  Padded batch rows carry finite garbage
    # (gi = bias) and are dropped at the end; never reduce over batch in-kernel.
    h_seq = jnp.transpose(x, (1, 0, 2)).astype(cdtype)       # (T, B, D)
    if B_pad != B:
        h_seq = jnp.pad(h_seq, ((0, 0), (0, B_pad - B), (0, 0)))

    n_layers = len(prep["layers"])
    h_last = None
    for l, layer in enumerate(prep["layers"]):
        last = (l == n_layers - 1)
        out = lstm_layer(h_seq, layer["wih_t"], layer["whh_t"], layer["bias"],
                         last=last, batch_blocks=nb, vmem_limit=vmem_limit,
                         out_dtype=cdtype)
        if last:
            h_last = out                                     # (B_pad, H)
        else:
            h_seq = out                                      # (T, B_pad, H)

    out = classifier(h_last, prep["wcls_t"], prep["bcls"], vmem_limit)
    out = out[:B]                                            # drop batch padding
    return out.reshape(batch_size, -1)


# ----------------------------------------------------------------------------
# Deterministic parameter init (PyTorch-style uniform(-1/sqrt(H), 1/sqrt(H)))
# ----------------------------------------------------------------------------
def init_params(key, input_dim, hidden_dim, output_length, num_layers, batch_size):
    k = 1.0 / (hidden_dim ** 0.5)
    layers = []
    for l in range(num_layers):
        in_dim = input_dim if l == 0 else hidden_dim
        key, k1, k2, k3, k4 = jax.random.split(key, 5)
        layers.append({
            "w_ih": jax.random.uniform(k1, (4 * hidden_dim, in_dim),
                                       jnp.float32, -k, k),
            "w_hh": jax.random.uniform(k2, (4 * hidden_dim, hidden_dim),
                                       jnp.float32, -k, k),
            "b_ih": jax.random.uniform(k3, (4 * hidden_dim,), jnp.float32, -k, k),
            "b_hh": jax.random.uniform(k4, (4 * hidden_dim,), jnp.float32, -k, k),
        })
    out_features = output_length * batch_size
    key, k5, k6 = jax.random.split(key, 3)
    return {
        "lstm_layers": layers,
        "w_cls": jax.random.uniform(k5, (out_features, hidden_dim),
                                    jnp.float32, -k, k),
        "b_cls": jax.random.uniform(k6, (out_features,), jnp.float32, -k, k),
    }


# ----------------------------------------------------------------------------
# Pure-JAX reference (mirrors the kernel's dtype path for tight comparison)
# ----------------------------------------------------------------------------
def reference_forward(x, params, batch_size, compute_dtype=jnp.float32):
    B, T, _ = x.shape
    h_seq = jnp.transpose(x, (1, 0, 2)).astype(jnp.float32)   # (T, B, D)
    h_last = None
    for layer in params["lstm_layers"]:
        w_ih, w_hh = layer["w_ih"], layer["w_hh"]
        bias = (layer["b_ih"] + layer["b_hh"]).astype(jnp.float32)
        H = w_hh.shape[1]
        wih_t = w_ih.T.astype(compute_dtype)
        whh_t = w_hh.T.astype(compute_dtype)
        in_dim = h_seq.shape[-1]
        gi = (jnp.dot(h_seq.reshape(T * B, in_dim).astype(compute_dtype), wih_t,
                      preferred_element_type=jnp.float32) + bias
              ).reshape(T, B, 4 * H)

        def step(carry, gi_t):
            h_prev, c_prev = carry
            gates = gi_t + jnp.dot(h_prev.astype(compute_dtype), whh_t,
                                   preferred_element_type=jnp.float32)
            i = jax.nn.sigmoid(gates[:, 0 * H:1 * H])
            f = jax.nn.sigmoid(gates[:, 1 * H:2 * H])
            g = jnp.tanh(gates[:, 2 * H:3 * H])
            o = jax.nn.sigmoid(gates[:, 3 * H:4 * H])
            c_new = f * c_prev + i * g
            h_new = o * jnp.tanh(c_new)
            return (h_new, c_new), h_new

        init = (jnp.zeros((B, H), jnp.float32), jnp.zeros((B, H), jnp.float32))
        (h_last, _), h_seq = jax.lax.scan(step, init, gi)
    out = (jnp.dot(h_last.astype(compute_dtype),
                   params["w_cls"].T.astype(compute_dtype),
                   preferred_element_type=jnp.float32)
           + params["b_cls"].astype(jnp.float32))
    return out.reshape(batch_size, -1)


# ----------------------------------------------------------------------------
if __name__ == "__main__":
    batch_size = 2
    seq_len = 8
    input_dim = 16
    hidden_dim = 32          # 4H = 128 -> lane-aligned gate matmul output
    output_length = 4
    num_layers = 2

    key = jax.random.PRNGKey(0)
    key, kx, kp = jax.random.split(key, 3)
    x = jax.random.normal(kx, (batch_size, seq_len, input_dim), jnp.float32)
    params = init_params(kp, input_dim, hidden_dim, output_length,
                         num_layers, batch_size)

    # Strict correctness check with float32 weights.
    prep_f32 = prepare_params(params, compute_dtype=jnp.float32)
    out_f32 = jax.block_until_ready(
        lstm_model_forward(x, prep_f32, batch_size=batch_size))
    ref_f32 = reference_forward(x, params, batch_size, compute_dtype=jnp.float32)
    assert out_f32.shape == (batch_size, output_length * batch_size)
    assert jnp.allclose(out_f32, ref_f32, atol=1e-3, rtol=1e-3), \
        f"f32 mismatch: max|diff|={jnp.max(jnp.abs(out_f32 - ref_f32))}"

    # Performance configuration: bf16 weights / MXU inputs / inter-layer
    # activations, f32 accumulation and gate math.
    prep_bf16 = prepare_params(params, compute_dtype=jnp.bfloat16)
    out_bf16 = jax.block_until_ready(
        lstm_model_forward(x, prep_bf16, batch_size=batch_size))
    ref_bf16 = reference_forward(x, params, batch_size, compute_dtype=jnp.bfloat16)
    assert out_bf16.shape == (batch_size, output_length * batch_size)
    assert jnp.allclose(out_bf16, ref_bf16, atol=1e-2, rtol=1e-2), \
        f"bf16 mismatch: max|diff|={jnp.max(jnp.abs(out_bf16 - ref_bf16))}"

    print("KERNEL_OK")
</pallas_src>

<mosaic_0001>
module attributes {stable_mosaic.version = 11 : i64} {
  func.func @_lstm_last_kernel(%arg0: i32, %arg1: i32, %arg2: memref<8x8x32xf32, #tpu.memory_space<vmem>>, %arg3: memref<32x128xf32, #tpu.memory_space<vmem>>, %arg4: memref<32x128xf32, #tpu.memory_space<vmem>>, %arg5: memref<1x128xf32, #tpu.memory_space<vmem>>, %arg6: memref<8x32xf32, #tpu.memory_space<vmem>>, %arg7: memref<8x32xf32, #tpu.memory_space<vmem>>, %arg8: memref<8x32xf32, #tpu.memory_space<vmem>>, %arg9: memref<8x8x128xf32, #tpu.memory_space<vmem>>) attributes {dimension_semantics = [#tpu.dimension_semantics<parallel>, #tpu.dimension_semantics<arbitrary>], iteration_bounds = array<i64: 1, 1>, scalar_prefetch = 0 : i64, scratch_operands = 3 : i64, tpu.core_type = #tpu.core_type<tc>, window_params = [{transform_indices = @transform_0, window_bounds = array<i64: 8, 8, 32>}, {pipeline_mode = #tpu.pipeline_mode<synchronous>, transform_indices = @transform_1, window_bounds = array<i64: 32, 128>}, {pipeline_mode = #tpu.pipeline_mode<synchronous>, transform_indices = @transform_2, window_bounds = array<i64: 32, 128>}, {pipeline_mode = #tpu.pipeline_mode<synchronous>, transform_indices = @transform_3, window_bounds = array<i64: 1, 128>}, {transform_indices = @transform_4, window_bounds = array<i64: 8, 32>}]} {
    %c0_i32 = arith.constant 0 : i32
    %0 = arith.cmpi eq, %arg1, %c0_i32 : i32
    %1 = arith.extui %0 : i1 to i32
    %c0_i32_0 = arith.constant 0 : i32
    %2 = arith.cmpi ne, %1, %c0_i32_0 : i32
    scf.if %2 {
      %cst_71 = arith.constant 0.000000e+00 : f32
      %260 = vector.broadcast %cst_71 : f32 to vector<8x32xf32>
      %c0_72 = arith.constant 0 : index
      %c0_73 = arith.constant 0 : index
      %261 = vector.load %arg7[%c0_72, %c0_73] : memref<8x32xf32, #tpu.memory_space<vmem>>, vector<8x32xf32>
      tpu.vector_store %arg7[%c0_72, %c0_73], %260 {strides = array<i32>} : memref<8x32xf32, #tpu.memory_space<vmem>>, vector<8x32xf32>,
      %cst_74 = arith.constant 0.000000e+00 : f32
      %262 = vector.broadcast %cst_74 : f32 to vector<8x32xf32>
      %c0_75 = arith.constant 0 : index
      %c0_76 = arith.constant 0 : index
      %263 = vector.load %arg8[%c0_75, %c0_76] : memref<8x32xf32, #tpu.memory_space<vmem>>, vector<8x32xf32>
      tpu.vector_store %arg8[%c0_75, %c0_76], %262 {strides = array<i32>} : memref<8x32xf32, #tpu.memory_space<vmem>>, vector<8x32xf32>,
    } else {
    }
    %c0 = arith.constant 0 : index
    %c0_1 = arith.constant 0 : index
    %c0_2 = arith.constant 0 : index
    %3 = vector.load %arg2[%c0, %c0_1, %c0_2] : memref<8x8x32xf32, #tpu.memory_space<vmem>>, vector<8x8x32xf32>
    %4 = vector.shape_cast %3 : vector<8x8x32xf32> to vector<64x32xf32>
    %c0_3 = arith.constant 0 : index
    %c0_4 = arith.constant 0 : index
    %5 = vector.load %arg3[%c0_3, %c0_4] : memref<32x128xf32, #tpu.memory_space<vmem>>, vector<32x128xf32>
    %cst = arith.constant dense<0.000000e+00> : vector<64x128xf32>
    %6 = tpu.matmul %4, %5, %cst {dimension_numbers = #tpu.dot_dimension_numbers<[1], [0], [0], [1], [0, 0, 1, 1], [], []>} : vector<64x32xf32>, vector<32x128xf32>, vector<64x128xf32> -> vector<64x128xf32>
    %c0_5 = arith.constant 0 : index
    %c0_6 = arith.constant 0 : index
    %7 = vector.load %arg5[%c0_5, %c0_6] : memref<1x128xf32, #tpu.memory_space<vmem>>, vector<1x128xf32>
    %8 = vector.broadcast %7 : vector<1x128xf32> to vector<64x128xf32>
    %9 = arith.addf %6, %8 : vector<64x128xf32>
    %10 = vector.shape_cast %9 : vector<64x128xf32> to vector<8x8x128xf32>
    %c0_7 = arith.constant 0 : index
    %c0_8 = arith.constant 0 : index
    %c0_9 = arith.constant 0 : index
    %11 = vector.load %arg9[%c0_7, %c0_8, %c0_9] : memref<8x8x128xf32, #tpu.memory_space<vmem>>, vector<8x8x128xf32>
    tpu.vector_store %arg9[%c0_7, %c0_8, %c0_9], %10 {strides = array<i32>} : memref<8x8x128xf32, #tpu.memory_space<vmem>>, vector<8x8x128xf32>,
    %c0_10 = arith.constant 0 : index
    %c0_11 = arith.constant 0 : index
    %12 = vector.load %arg4[%c0_10, %c0_11] : memref<32x128xf32, #tpu.memory_space<vmem>>, vector<32x128xf32>
    %c0_12 = arith.constant 0 : index
    %c0_13 = arith.constant 0 : index
    %13 = vector.load %arg7[%c0_12, %c0_13] : memref<8x32xf32, #tpu.memory_space<vmem>>, vector<8x32xf32>
    %c0_14 = arith.constant 0 : index
    %c0_15 = arith.constant 0 : index
    %14 = vector.load %arg8[%c0_14, %c0_15] : memref<8x32xf32, #tpu.memory_space<vmem>>, vector<8x32xf32>
    %c0_i32_16 = arith.constant 0 : i32
    %15 = arith.index_cast %c0_i32_16 : i32 to index
    %c0_17 = arith.constant 0 : index
    %c0_18 = arith.constant 0 : index
    %16 = vector.load %arg9[%15, %c0_17, %c0_18] : memref<8x8x128xf32, #tpu.memory_space<vmem>>, vector<1x8x128xf32>
    %17 = vector.shape_cast %16 : vector<1x8x128xf32> to vector<8x128xf32>
    %cst_19 = arith.constant dense<0.000000e+00> : vector<8x128xf32>
    %18 = tpu.matmul %13, %12, %cst_19 {dimension_numbers = #tpu.dot_dimension_numbers<[1], [0], [0], [1], [0, 0, 1, 1], [], []>} : vector<8x32xf32>, vector<32x128xf32>, vector<8x128xf32> -> vector<8x128xf32>
    %19 = arith.addf %17, %18 : vector<8x128xf32>
    %20 = vector.extract_strided_slice %19 {offsets = [0, 0], sizes = [8, 32], strides = [1, 1]} : vector<8x128xf32> to vector<8x32xf32>
    %21 = arith.negf %20 : vector<8x32xf32>
    %22 = math.exp %21 : vector<8x32xf32>
    %cst_20 = arith.constant 1.000000e+00 : f32
    %23 = vector.broadcast %cst_20 : f32 to vector<8x32xf32>
    %24 = arith.addf %23, %22 : vector<8x32xf32>
    %25 = arith.divf %23, %24 : vector<8x32xf32>
    %26 = vector.extract_strided_slice %19 {offsets = [0, 32], sizes = [8, 32], strides = [1, 1]} : vector<8x128xf32> to vector<8x32xf32>
    %27 = arith.negf %26 : vector<8x32xf32>
    %28 = math.exp %27 : vector<8x32xf32>
    %cst_21 = arith.constant 1.000000e+00 : f32
    %29 = vector.broadcast %cst_21 : f32 to vector<8x32xf32>
    %30 = arith.addf %29, %28 : vector<8x32xf32>
    %31 = arith.divf %29, %30 : vector<8x32xf32>
    %32 = vector.extract_strided_slice %19 {offsets = [0, 64], sizes = [8, 32], strides = [1, 1]} : vector<8x128xf32> to vector<8x32xf32>
    %33 = math.tanh %32 : vector<8x32xf32>
    %34 = vector.extract_strided_slice %19 {offsets = [0, 96], sizes = [8, 32], strides = [1, 1]} : vector<8x128xf32> to vector<8x32xf32>
    %35 = arith.negf %34 : vector<8x32xf32>
    %36 = math.exp %35 : vector<8x32xf32>
    %cst_22 = arith.constant 1.000000e+00 : f32
    %37 = vector.broadcast %cst_22 : f32 to vector<8x32xf32>
    %38 = arith.addf %37, %36 : vector<8x32xf32>
    %39 = arith.divf %37, %38 : vector<8x32xf32>
    %40 = arith.mulf %31, %14 : vector<8x32xf32>
    %41 = arith.mulf %25, %33 : vector<8x32xf32>
    %42 = arith.addf %40, %41 : vector<8x32xf32>
    %43 = math.tanh %42 : vector<8x32xf32>
    %44 = arith.mulf %39, %43 : vector<8x32xf32>
    %c1_i32 = arith.constant 1 : i32
    %45 = arith.index_cast %c1_i32 : i32 to index
    %c0_23 = arith.constant 0 : index
    %c0_24 = arith.constant 0 : index
    %46 = vector.load %arg9[%45, %c0_23, %c0_24] : memref<8x8x128xf32, #tpu.memory_space<vmem>>, vector<1x8x128xf32>
    %47 = vector.shape_cast %46 : vector<1x8x128xf32> to vector<8x128xf32>
    %cst_25 = arith.constant dense<0.000000e+00> : vector<8x128xf32>
    %48 = tpu.matmul %44, %12, %cst_25 {dimension_numbers = #tpu.dot_dimension_numbers<[1], [0], [0], [1], [0, 0, 1, 1], [], []>} : vector<8x32xf32>, vector<32x128xf32>, vector<8x128xf32> -> vector<8x128xf32>
    %49 = arith.addf %47, %48 : vector<8x128xf32>
    %50 = vector.extract_strided_slice %49 {offsets = [0, 0], sizes = [8, 32], strides = [1, 1]} : vector<8x128xf32> to vector<8x32xf32>
    %51 = arith.negf %50 : vector<8x32xf32>
    %52 = math.exp %51 : vector<8x32xf32>
    %cst_26 = arith.constant 1.000000e+00 : f32
    %53 = vector.broadcast %cst_26 : f32 to vector<8x32xf32>
    %54 = arith.addf %53, %52 : vector<8x32xf32>
    %55 = arith.divf %53, %54 : vector<8x32xf32>
    %56 = vector.extract_strided_slice %49 {offsets = [0, 32], sizes = [8, 32], strides = [1, 1]} : vector<8x128xf32> to vector<8x32xf32>
    %57 = arith.negf %56 : vector<8x32xf32>
    %58 = math.exp %57 : vector<8x32xf32>
    %cst_27 = arith.constant 1.000000e+00 : f32
    %59 = vector.broadcast %cst_27 : f32 to vector<8x32xf32>
    %60 = arith.addf %59, %58 : vector<8x32xf32>
    %61 = arith.divf %59, %60 : vector<8x32xf32>
    %62 = vector.extract_strided_slice %49 {offsets = [0, 64], sizes = [8, 32], strides = [1, 1]} : vector<8x128xf32> to vector<8x32xf32>
    %63 = math.tanh %62 : vector<8x32xf32>
    %64 = vector.extract_strided_slice %49 {offsets = [0, 96], sizes = [8, 32], strides = [1, 1]} : vector<8x128xf32> to vector<8x32xf32>
    %65 = arith.negf %64 : vector<8x32xf32>
    %66 = math.exp %65 : vector<8x32xf32>
    %cst_28 = arith.constant 1.000000e+00 : f32
    %67 = vector.broadcast %cst_28 : f32 to vector<8x32xf32>
    %68 = arith.addf %67, %66 : vector<8x32xf32>
    %69 = arith.divf %67, %68 : vector<8x32xf32>
    %70 = arith.mulf %61, %42 : vector<8x32xf32>
    %71 = arith.mulf %55, %63 : vector<8x32xf32>
    %72 = arith.addf %70, %71 : vector<8x32xf32>
    %73 = math.tanh %72 : vector<8x32xf32>
    %74 = arith.mulf %69, %73 : vector<8x32xf32>
    %c2_i32 = arith.constant 2 : i32
    %75 = arith.index_cast %c2_i32 : i32 to index
    %c0_29 = arith.constant 0 : index
    %c0_30 = arith.constant 0 : index
    %76 = vector.load %arg9[%75, %c0_29, %c0_30] : memref<8x8x128xf32, #tpu.memory_space<vmem>>, vector<1x8x128xf32>
    %77 = vector.shape_cast %76 : vector<1x8x128xf32> to vector<8x128xf32>
    %cst_31 = arith.constant dense<0.000000e+00> : vector<8x128xf32>
    %78 = tpu.matmul %74, %12, %cst_31 {dimension_numbers = #tpu.dot_dimension_numbers<[1], [0], [0], [1], [0, 0, 1, 1], [], []>} : vector<8x32xf32>, vector<32x128xf32>, vector<8x128xf32> -> vector<8x128xf32>
    %79 = arith.addf %77, %78 : vector<8x128xf32>
    %80 = vector.extract_strided_slice %79 {offsets = [0, 0], sizes = [8, 32], strides = [1, 1]} : vector<8x128xf32> to vector<8x32xf32>
    %81 = arith.negf %80 : vector<8x32xf32>
    %82 = math.exp %81 : vector<8x32xf32>
    %cst_32 = arith.constant 1.000000e+00 : f32
    %83 = vector.broadcast %cst_32 : f32 to vector<8x32xf32>
    %84 = arith.addf %83, %82 : vector<8x32xf32>
    %85 = arith.divf %83, %84 : vector<8x32xf32>
    %86 = vector.extract_strided_slice %79 {offsets = [0, 32], sizes = [8, 32], strides = [1, 1]} : vector<8x128xf32> to vector<8x32xf32>
    %87 = arith.negf %86 : vector<8x32xf32>
    %88 = math.exp %87 : vector<8x32xf32>
    %cst_33 = arith.constant 1.000000e+00 : f32
    %89 = vector.broadcast %cst_33 : f32 to vector<8x32xf32>
    %90 = arith.addf %89, %88 : vector<8x32xf32>
    %91 = arith.divf %89, %90 : vector<8x32xf32>
    %92 = vector.extract_strided_slice %79 {offsets = [0, 64], sizes = [8, 32], strides = [1, 1]} : vector<8x128xf32> to vector<8x32xf32>
    %93 = math.tanh %92 : vector<8x32xf32>
    %94 = vector.extract_strided_slice %79 {offsets = [0, 96], sizes = [8, 32], strides = [1, 1]} : vector<8x128xf32> to vector<8x32xf32>
    %95 = arith.negf %94 : vector<8x32xf32>
    %96 = math.exp %95 : vector<8x32xf32>
    %cst_34 = arith.constant 1.000000e+00 : f32
    %97 = vector.broadcast %cst_34 : f32 to vector<8x32xf32>
    %98 = arith.addf %97, %96 : vector<8x32xf32>
    %99 = arith.divf %97, %98 : vector<8x32xf32>
    %100 = arith.mulf %91, %72 : vector<8x32xf32>
    %101 = arith.mulf %85, %93 : vector<8x32xf32>
    %102 = arith.addf %100, %101 : vector<8x32xf32>
    %103 = math.tanh %102 : vector<8x32xf32>
    %104 = arith.mulf %99, %103 : vector<8x32xf32>
    %c3_i32 = arith.constant 3 : i32
    %105 = arith.index_cast %c3_i32 : i32 to index
    %c0_35 = arith.constant 0 : index
    %c0_36 = arith.constant 0 : index
    %106 = vector.load %arg9[%105, %c0_35, %c0_36] : memref<8x8x128xf32, #tpu.memory_space<vmem>>, vector<1x8x128xf32>
    %107 = vector.shape_cast %106 : vector<1x8x128xf32> to vector<8x128xf32>
    %cst_37 = arith.constant dense<0.000000e+00> : vector<8x128xf32>
    %108 = tpu.matmul %104, %12, %cst_37 {dimension_numbers = #tpu.dot_dimension_numbers<[1], [0], [0], [1], [0, 0, 1, 1], [], []>} : vector<8x32xf32>, vector<32x128xf32>, vector<8x128xf32> -> vector<8x128xf32>
    %109 = arith.addf %107, %108 : vector<8x128xf32>
    %110 = vector.extract_strided_slice %109 {offsets = [0, 0], sizes = [8, 32], strides = [1, 1]} : vector<8x128xf32> to vector<8x32xf32>
    %111 = arith.negf %110 : vector<8x32xf32>
    %112 = math.exp %111 : vector<8x32xf32>
    %cst_38 = arith.constant 1.000000e+00 : f32
    %113 = vector.broadcast %cst_38 : f32 to vector<8x32xf32>
    %114 = arith.addf %113, %112 : vector<8x32xf32>
    %115 = arith.divf %113, %114 : vector<8x32xf32>
    %116 = vector.extract_strided_slice %109 {offsets = [0, 32], sizes = [8, 32], strides = [1, 1]} : vector<8x128xf32> to vector<8x32xf32>
    %117 = arith.negf %116 : vector<8x32xf32>
    %118 = math.exp %117 : vector<8x32xf32>
    %cst_39 = arith.constant 1.000000e+00 : f32
    %119 = vector.broadcast %cst_39 : f32 to vector<8x32xf32>
    %120 = arith.addf %119, %118 : vector<8x32xf32>
    %121 = arith.divf %119, %120 : vector<8x32xf32>
    %122 = vector.extract_strided_slice %109 {offsets = [0, 64], sizes = [8, 32], strides = [1, 1]} : vector<8x128xf32> to vector<8x32xf32>
    %123 = math.tanh %122 : vector<8x32xf32>
    %124 = vector.extract_strided_slice %109 {offsets = [0, 96], sizes = [8, 32], strides = [1, 1]} : vector<8x128xf32> to vector<8x32xf32>
    %125 = arith.negf %124 : vector<8x32xf32>
    %126 = math.exp %125 : vector<8x32xf32>
    %cst_40 = arith.constant 1.000000e+00 : f32
    %127 = vector.broadcast %cst_40 : f32 to vector<8x32xf32>
    %128 = arith.addf %127, %126 : vector<8x32xf32>
    %129 = arith.divf %127, %128 : vector<8x32xf32>
    %130 = arith.mulf %121, %102 : vector<8x32xf32>
    %131 = arith.mulf %115, %123 : vector<8x32xf32>
    %132 = arith.addf %130, %131 : vector<8x32xf32>
    %133 = math.tanh %132 : vector<8x32xf32>
    %134 = arith.mulf %129, %133 : vector<8x32xf32>
    %c4_i32 = arith.constant 4 : i32
    %135 = arith.index_cast %c4_i32 : i32 to index
    %c0_41 = arith.constant 0 : index
    %c0_42 = arith.constant 0 : index
    %136 = vector.load %arg9[%135, %c0_41, %c0_42] : memref<8x8x128xf32, #tpu.memory_space<vmem>>, vector<1x8x128xf32>
    %137 = vector.shape_cast %136 : vector<1x8x128xf32> to vector<8x128xf32>
    %cst_43 = arith.constant dense<0.000000e+00> : vector<8x128xf32>
    %138 = tpu.matmul %134, %12, %cst_43 {dimension_numbers = #tpu.dot_dimension_numbers<[1], [0], [0], [1], [0, 0, 1, 1], [], []>} : vector<8x32xf32>, vector<32x128xf32>, vector<8x128xf32> -> vector<8x128xf32>
    %139 = arith.addf %137, %138 : vector<8x128xf32>
    %140 = vector.extract_strided_slice %139 {offsets = [0, 0], sizes = [8, 32], strides = [1, 1]} : vector<8x128xf32> to vector<8x32xf32>
    %141 = arith.negf %140 : vector<8x32xf32>
    %142 = math.exp %141 : vector<8x32xf32>
    %cst_44 = arith.constant 1.000000e+00 : f32
    %143 = vector.broadcast %cst_44 : f32 to vector<8x32xf32>
    %144 = arith.addf %143, %142 : vector<8x32xf32>
    %145 = arith.divf %143, %144 : vector<8x32xf32>
    %146 = vector.extract_strided_slice %139 {offsets = [0, 32], sizes = [8, 32], strides = [1, 1]} : vector<8x128xf32> to vector<8x32xf32>
    %147 = arith.negf %146 : vector<8x32xf32>
    %148 = math.exp %147 : vector<8x32xf32>
    %cst_45 = arith.constant 1.000000e+00 : f32
    %149 = vector.broadcast %cst_45 : f32 to vector<8x32xf32>
    %150 = arith.addf %149, %148 : vector<8x32xf32>
    %151 = arith.divf %149, %150 : vector<8x32xf32>
    %152 = vector.extract_strided_slice %139 {offsets = [0, 64], sizes = [8, 32], strides = [1, 1]} : vector<8x128xf32> to vector<8x32xf32>
    %153 = math.tanh %152 : vector<8x32xf32>
    %154 = vector.extract_strided_slice %139 {offsets = [0, 96], sizes = [8, 32], strides = [1, 1]} : vector<8x128xf32> to vector<8x32xf32>
    %155 = arith.negf %154 : vector<8x32xf32>
    %156 = math.exp %155 : vector<8x32xf32>
    %cst_46 = arith.constant 1.000000e+00 : f32
    %157 = vector.broadcast %cst_46 : f32 to vector<8x32xf32>
    %158 = arith.addf %157, %156 : vector<8x32xf32>
    %159 = arith.divf %157, %158 : vector<8x32xf32>
    %160 = arith.mulf %151, %132 : vector<8x32xf32>
    %161 = arith.mulf %145, %153 : vector<8x32xf32>
    %162 = arith.addf %160, %161 : vector<8x32xf32>
    %163 = math.tanh %162 : vector<8x32xf32>
    %164 = arith.mulf %159, %163 : vector<8x32xf32>
    %c5_i32 = arith.constant 5 : i32
    %165 = arith.index_cast %c5_i32 : i32 to index
    %c0_47 = arith.constant 0 : index
    %c0_48 = arith.constant 0 : index
    %166 = vector.load %arg9[%165, %c0_47, %c0_48] : memref<8x8x128xf32, #tpu.memory_space<vmem>>, vector<1x8x128xf32>
    %167 = vector.shape_cast %166 : vector<1x8x128xf32> to vector<8x128xf32>
    %cst_49 = arith.constant dense<0.000000e+00> : vector<8x128xf32>
    %168 = tpu.matmul %164, %12, %cst_49 {dimension_numbers = #tpu.dot_dimension_numbers<[1], [0], [0], [1], [0, 0, 1, 1], [], []>} : vector<8x32xf32>, vector<32x128xf32>, vector<8x128xf32> -> vector<8x128xf32>
    %169 = arith.addf %167, %168 : vector<8x128xf32>
    %170 = vector.extract_strided_slice %169 {offsets = [0, 0], sizes = [8, 32], strides = [1, 1]} : vector<8x128xf32> to vector<8x32xf32>
    %171 = arith.negf %170 : vector<8x32xf32>
    %172 = math.exp %171 : vector<8x32xf32>
    %cst_50 = arith.constant 1.000000e+00 : f32
    %173 = vector.broadcast %cst_50 : f32 to vector<8x32xf32>
    %174 = arith.addf %173, %172 : vector<8x32xf32>
    %175 = arith.divf %173, %174 : vector<8x32xf32>
    %176 = vector.extract_strided_slice %169 {offsets = [0, 32], sizes = [8, 32], strides = [1, 1]} : vector<8x128xf32> to vector<8x32xf32>
    %177 = arith.negf %176 : vector<8x32xf32>
    %178 = math.exp %177 : vector<8x32xf32>
    %cst_51 = arith.constant 1.000000e+00 : f32
    %179 = vector.broadcast %cst_51 : f32 to vector<8x32xf32>
    %180 = arith.addf %179, %178 : vector<8x32xf32>
    %181 = arith.divf %179, %180 : vector<8x32xf32>
    %182 = vector.extract_strided_slice %169 {offsets = [0, 64], sizes = [8, 32], strides = [1, 1]} : vector<8x128xf32> to vector<8x32xf32>
    %183 = math.tanh %182 : vector<8x32xf32>
    %184 = vector.extract_strided_slice %169 {offsets = [0, 96], sizes = [8, 32], strides = [1, 1]} : vector<8x128xf32> to vector<8x32xf32>
    %185 = arith.negf %184 : vector<8x32xf32>
    %186 = math.exp %185 : vector<8x32xf32>
    %cst_52 = arith.constant 1.000000e+00 : f32
    %187 = vector.broadcast %cst_52 : f32 to vector<8x32xf32>
    %188 = arith.addf %187, %186 : vector<8x32xf32>
    %189 = arith.divf %187, %188 : vector<8x32xf32>
    %190 = arith.mulf %181, %162 : vector<8x32xf32>
    %191 = arith.mulf %175, %183 : vector<8x32xf32>
    %192 = arith.addf %190, %191 : vector<8x32xf32>
    %193 = math.tanh %192 : vector<8x32xf32>
    %194 = arith.mulf %189, %193 : vector<8x32xf32>
    %c6_i32 = arith.constant 6 : i32
    %195 = arith.index_cast %c6_i32 : i32 to index
    %c0_53 = arith.constant 0 : index
    %c0_54 = arith.constant 0 : index
    %196 = vector.load %arg9[%195, %c0_53, %c0_54] : memref<8x8x128xf32, #tpu.memory_space<vmem>>, vector<1x8x128xf32>
    %197 = vector.shape_cast %196 : vector<1x8x128xf32> to vector<8x128xf32>
    %cst_55 = arith.constant dense<0.000000e+00> : vector<8x128xf32>
    %198 = tpu.matmul %194, %12, %cst_55 {dimension_numbers = #tpu.dot_dimension_numbers<[1], [0], [0], [1], [0, 0, 1, 1], [], []>} : vector<8x32xf32>, vector<32x128xf32>, vector<8x128xf32> -> vector<8x128xf32>
    %199 = arith.addf %197, %198 : vector<8x128xf32>
    %200 = vector.extract_strided_slice %199 {offsets = [0, 0], sizes = [8, 32], strides = [1, 1]} : vector<8x128xf32> to vector<8x32xf32>
    %201 = arith.negf %200 : vector<8x32xf32>
    %202 = math.exp %201 : vector<8x32xf32>
    %cst_56 = arith.constant 1.000000e+00 : f32
    %203 = vector.broadcast %cst_56 : f32 to vector<8x32xf32>
    %204 = arith.addf %203, %202 : vector<8x32xf32>
    %205 = arith.divf %203, %204 : vector<8x32xf32>
    %206 = vector.extract_strided_slice %199 {offsets = [0, 32], sizes = [8, 32], strides = [1, 1]} : vector<8x128xf32> to vector<8x32xf32>
    %207 = arith.negf %206 : vector<8x32xf32>
    %208 = math.exp %207 : vector<8x32xf32>
    %cst_57 = arith.constant 1.000000e+00 : f32
    %209 = vector.broadcast %cst_57 : f32 to vector<8x32xf32>
    %210 = arith.addf %209, %208 : vector<8x32xf32>
    %211 = arith.divf %209, %210 : vector<8x32xf32>
    %212 = vector.extract_strided_slice %199 {offsets = [0, 64], sizes = [8, 32], strides = [1, 1]} : vector<8x128xf32> to vector<8x32xf32>
    %213 = math.tanh %212 : vector<8x32xf32>
    %214 = vector.extract_strided_slice %199 {offsets = [0, 96], sizes = [8, 32], strides = [1, 1]} : vector<8x128xf32> to vector<8x32xf32>
    %215 = arith.negf %214 : vector<8x32xf32>
    %216 = math.exp %215 : vector<8x32xf32>
    %cst_58 = arith.constant 1.000000e+00 : f32
    %217 = vector.broadcast %cst_58 : f32 to vector<8x32xf32>
    %218 = arith.addf %217, %216 : vector<8x32xf32>
    %219 = arith.divf %217, %218 : vector<8x32xf32>
    %220 = arith.mulf %211, %192 : vector<8x32xf32>
    %221 = arith.mulf %205, %213 : vector<8x32xf32>
    %222 = arith.addf %220, %221 : vector<8x32xf32>
    %223 = math.tanh %222 : vector<8x32xf32>
    %224 = arith.mulf %219, %223 : vector<8x32xf32>
    %c7_i32 = arith.constant 7 : i32
    %225 = arith.index_cast %c7_i32 : i32 to index
    %c0_59 = arith.constant 0 : index
    %c0_60 = arith.constant 0 : index
    %226 = vector.load %arg9[%225, %c0_59, %c0_60] : memref<8x8x128xf32, #tpu.memory_space<vmem>>, vector<1x8x128xf32>
    %227 = vector.shape_cast %226 : vector<1x8x128xf32> to vector<8x128xf32>
    %cst_61 = arith.constant dense<0.000000e+00> : vector<8x128xf32>
    %228 = tpu.matmul %224, %12, %cst_61 {dimension_numbers = #tpu.dot_dimension_numbers<[1], [0], [0], [1], [0, 0, 1, 1], [], []>} : vector<8x32xf32>, vector<32x128xf32>, vector<8x128xf32> -> vector<8x128xf32>
    %229 = arith.addf %227, %228 : vector<8x128xf32>
    %230 = vector.extract_strided_slice %229 {offsets = [0, 0], sizes = [8, 32], strides = [1, 1]} : vector<8x128xf32> to vector<8x32xf32>
    %231 = arith.negf %230 : vector<8x32xf32>
    %232 = math.exp %231 : vector<8x32xf32>
    %cst_62 = arith.constant 1.000000e+00 : f32
    %233 = vector.broadcast %cst_62 : f32 to vector<8x32xf32>
    %234 = arith.addf %233, %232 : vector<8x32xf32>
    %235 = arith.divf %233, %234 : vector<8x32xf32>
    %236 = vector.extract_strided_slice %229 {offsets = [0, 32], sizes = [8, 32], strides = [1, 1]} : vector<8x128xf32> to vector<8x32xf32>
    %237 = arith.negf %236 : vector<8x32xf32>
    %238 = math.exp %237 : vector<8x32xf32>
    %cst_63 = arith.constant 1.000000e+00 : f32
    %239 = vector.broadcast %cst_63 : f32 to vector<8x32xf32>
    %240 = arith.addf %239, %238 : vector<8x32xf32>
    %241 = arith.divf %239, %240 : vector<8x32xf32>
    %242 = vector.extract_strided_slice %229 {offsets = [0, 64], sizes = [8, 32], strides = [1, 1]} : vector<8x128xf32> to vector<8x32xf32>
    %243 = math.tanh %242 : vector<8x32xf32>
    %244 = vector.extract_strided_slice %229 {offsets = [0, 96], sizes = [8, 32], strides = [1, 1]} : vector<8x128xf32> to vector<8x32xf32>
    %245 = arith.negf %244 : vector<8x32xf32>
    %246 = math.exp %245 : vector<8x32xf32>
    %cst_64 = arith.constant 1.000000e+00 : f32
    %247 = vector.broadcast %cst_64 : f32 to vector<8x32xf32>
    %248 = arith.addf %247, %246 : vector<8x32xf32>
    %249 = arith.divf %247, %248 : vector<8x32xf32>
    %250 = arith.mulf %241, %222 : vector<8x32xf32>
    %251 = arith.mulf %235, %243 : vector<8x32xf32>
    %252 = arith.addf %250, %251 : vector<8x32xf32>
    %253 = math.tanh %252 : vector<8x32xf32>
    %254 = arith.mulf %249, %253 : vector<8x32xf32>
    %c8_i32 = arith.constant 8 : i32
    %c0_65 = arith.constant 0 : index
    %c0_66 = arith.constant 0 : index
    %255 = vector.load %arg7[%c0_65, %c0_66] : memref<8x32xf32, #tpu.memory_space<vmem>>, vector<8x32xf32>
    tpu.vector_store %arg7[%c0_65, %c0_66], %254 {strides = array<i32>} : memref<8x32xf32, #tpu.memory_space<vmem>>, vector<8x32xf32>,
    %c0_67 = arith.constant 0 : index
    %c0_68 = arith.constant 0 : index
    %256 = vector.load %arg8[%c0_67, %c0_68] : memref<8x32xf32, #tpu.memory_space<vmem>>, vector<8x32xf32>
    tpu.vector_store %arg8[%c0_67, %c0_68], %252 {strides = array<i32>} : memref<8x32xf32, #tpu.memory_space<vmem>>, vector<8x32xf32>,
    %c0_i32_69 = arith.constant 0 : i32
    %257 = arith.cmpi eq, %arg1, %c0_i32_69 : i32
    %258 = arith.extui %257 : i1 to i32
    %c0_i32_70 = arith.constant 0 : i32
    %259 = arith.cmpi ne, %258, %c0_i32_70 : i32
    scf.if %259 {
      %c0_71 = arith.constant 0 : index
      %c0_72 = arith.constant 0 : index
      %260 = vector.load %arg6[%c0_71, %c0_72] : memref<8x32xf32, #tpu.memory_space<vmem>>, vector<8x32xf32>
      tpu.vector_store %arg6[%c0_71, %c0_72], %254 {strides = array<i32>} : memref<8x32xf32, #tpu.memory_space<vmem>>, vector<8x32xf32>,
    } else {
    }
    return
  }
  func.func @transform_0(%arg0: i32, %arg1: i32) -> (i32, i32, i32) {
    %c0_i32 = arith.constant 0 : i32
    %c0_i32_0 = arith.constant 0 : i32
    return %arg1, %arg0, %c0_i32 : i32, i32, i32
  }
  func.func @transform_1(%arg0: i32, %arg1: i32) -> (i32, i32) {
    %c0_i32 = arith.constant 0 : i32
    %c0_i32_0 = arith.constant 0 : i32
    %c0_i32_1 = arith.constant 0 : i32
    return %c0_i32, %c0_i32_0 : i32, i32
  }
  func.func @transform_2(%arg0: i32, %arg1: i32) -> (i32, i32) {
    %c0_i32 = arith.constant 0 : i32
    %c0_i32_0 = arith.constant 0 : i32
    %c0_i32_1 = arith.constant 0 : i32
    return %c0_i32, %c0_i32_0 : i32, i32
  }
  func.func @transform_3(%arg0: i32, %arg1: i32) -> (i32, i32) {
    %c0_i32 = arith.constant 0 : i32
    %c0_i32_0 = arith.constant 0 : i32
    %c0_i32_1 = arith.constant 0 : i32
    return %c0_i32, %c0_i32_0 : i32, i32
  }
  func.func @transform_4(%arg0: i32, %arg1: i32) -> (i32, i32) {
    %c0_i32 = arith.constant 0 : i32
    %c0_i32_0 = arith.constant 0 : i32
    return %arg0, %c0_i32 : i32, i32
  }
}

module attributes {stable_mosaic.version = 11 : i64} {
  func.func @_lstm_layer_kernel(%arg0: i32, %arg1: i32, %arg2: memref<8x8x16xf32, #tpu.memory_space<vmem>>, %arg3: memref<16x128xf32, #tpu.memory_space<vmem>>, %arg4: memref<32x128xf32, #tpu.memory_space<vmem>>, %arg5: memref<1x128xf32, #tpu.memory_space<vmem>>, %arg6: memref<8x8x32xf32, #tpu.memory_space<vmem>>, %arg7: memref<8x32xf32, #tpu.memory_space<vmem>>, %arg8: memref<8x32xf32, #tpu.memory_space<vmem>>, %arg9: memref<8x8x128xf32, #tpu.memory_space<vmem>>) attributes {dimension_semantics = [#tpu.dimension_semantics<parallel>, #tpu.dimension_semantics<arbitrary>], iteration_bounds = array<i64: 1, 1>, scalar_prefetch = 0 : i64, scratch_operands = 3 : i64, tpu.core_type = #tpu.core_type<tc>, window_params = [{transform_indices = @transform_0, window_bounds = array<i64: 8, 8, 16>}, {pipeline_mode = #tpu.pipeline_mode<synchronous>, transform_indices = @transform_1, window_bounds = array<i64: 16, 128>}, {pipeline_mode = #tpu.pipeline_mode<synchronous>, transform_indices = @transform_2, window_bounds = array<i64: 32, 128>}, {pipeline_mode = #tpu.pipeline_mode<synchronous>, transform_indices = @transform_3, window_bounds = array<i64: 1, 128>}, {transform_indices = @transform_4, window_bounds = array<i64: 8, 8, 32>}]} {
    %c0_i32 = arith.constant 0 : i32
    %0 = arith.cmpi eq, %arg1, %c0_i32 : i32
    %1 = arith.extui %0 : i1 to i32
    %c0_i32_0 = arith.constant 0 : i32
    %2 = arith.cmpi ne, %1, %c0_i32_0 : i32
    scf.if %2 {
      %cst_85 = arith.constant 0.000000e+00 : f32
      %289 = vector.broadcast %cst_85 : f32 to vector<8x32xf32>
      %c0_86 = arith.constant 0 : index
      %c0_87 = arith.constant 0 : index
      %290 = vector.load %arg7[%c0_86, %c0_87] : memref<8x32xf32, #tpu.memory_space<vmem>>, vector<8x32xf32>
      tpu.vector_store %arg7[%c0_86, %c0_87], %289 {strides = array<i32>} : memref<8x32xf32, #tpu.memory_space<vmem>>, vector<8x32xf32>,
      %cst_88 = arith.constant 0.000000e+00 : f32
      %291 = vector.broadcast %cst_88 : f32 to vector<8x32xf32>
      %c0_89 = arith.constant 0 : index
      %c0_90 = arith.constant 0 : index
      %292 = vector.load %arg8[%c0_89, %c0_90] : memref<8x32xf32, #tpu.memory_space<vmem>>, vector<8x32xf32>
      tpu.vector_store %arg8[%c0_89, %c0_90], %291 {strides = array<i32>} : memref<8x32xf32, #tpu.memory_space<vmem>>, vector<8x32xf32>,
    } else {
    }
    %c0 = arith.constant 0 : index
    %c0_1 = arith.constant 0 : index
    %c0_2 = arith.constant 0 : index
    %3 = vector.load %arg2[%c0, %c0_1, %c0_2] : memref<8x8x16xf32, #tpu.memory_space<vmem>>, vector<8x8x16xf32>
    %4 = vector.shape_cast %3 : vector<8x8x16xf32> to vector<64x16xf32>
    %c0_3 = arith.constant 0 : index
    %c0_4 = arith.constant 0 : index
    %5 = vector.load %arg3[%c0_3, %c0_4] : memref<16x128xf32, #tpu.memory_space<vmem>>, vector<16x128xf32>
    %cst = arith.constant dense<0.000000e+00> : vector<64x128xf32>
    %6 = tpu.matmul %4, %5, %cst {dimension_numbers = #tpu.dot_dimension_numbers<[1], [0], [0], [1], [0, 0, 1, 1], [], []>} : vector<64x16xf32>, vector<16x128xf32>, vector<64x128xf32> -> vector<64x128xf32>
    %c0_5 = arith.constant 0 : index
    %c0_6 = arith.constant 0 : index
    %7 = vector.load %arg5[%c0_5, %c0_6] : memref<1x128xf32, #tpu.memory_space<vmem>>, vector<1x128xf32>
    %8 = vector.broadcast %7 : vector<1x128xf32> to vector<64x128xf32>
    %9 = arith.addf %6, %8 : vector<64x128xf32>
    %10 = vector.shape_cast %9 : vector<64x128xf32> to vector<8x8x128xf32>
    %c0_7 = arith.constant 0 : index
    %c0_8 = arith.constant 0 : index
    %c0_9 = arith.constant 0 : index
    %11 = vector.load %arg9[%c0_7, %c0_8, %c0_9] : memref<8x8x128xf32, #tpu.memory_space<vmem>>, vector<8x8x128xf32>
    tpu.vector_store %arg9[%c0_7, %c0_8, %c0_9], %10 {strides = array<i32>} : memref<8x8x128xf32, #tpu.memory_space<vmem>>, vector<8x8x128xf32>,
    %c0_10 = arith.constant 0 : index
    %c0_11 = arith.constant 0 : index
    %12 = vector.load %arg4[%c0_10, %c0_11] : memref<32x128xf32, #tpu.memory_space<vmem>>, vector<32x128xf32>
    %c0_12 = arith.constant 0 : index
    %c0_13 = arith.constant 0 : index
    %13 = vector.load %arg7[%c0_12, %c0_13] : memref<8x32xf32, #tpu.memory_space<vmem>>, vector<8x32xf32>
    %c0_14 = arith.constant 0 : index
    %c0_15 = arith.constant 0 : index
    %14 = vector.load %arg8[%c0_14, %c0_15] : memref<8x32xf32, #tpu.memory_space<vmem>>, vector<8x32xf32>
    %c0_i32_16 = arith.constant 0 : i32
    %15 = arith.index_cast %c0_i32_16 : i32 to index
    %c0_17 = arith.constant 0 : index
    %c0_18 = arith.constant 0 : index
    %16 = vector.load %arg9[%15, %c0_17, %c0_18] : memref<8x8x128xf32, #tpu.memory_space<vmem>>, vector<1x8x128xf32>
    %17 = vector.shape_cast %16 : vector<1x8x128xf32> to vector<8x128xf32>
    %cst_19 = arith.constant dense<0.000000e+00> : vector<8x128xf32>
    %18 = tpu.matmul %13, %12, %cst_19 {dimension_numbers = #tpu.dot_dimension_numbers<[1], [0], [0], [1], [0, 0, 1, 1], [], []>} : vector<8x32xf32>, vector<32x128xf32>, vector<8x128xf32> -> vector<8x128xf32>
    %19 = arith.addf %17, %18 : vector<8x128xf32>
    %20 = vector.extract_strided_slice %19 {offsets = [0, 0], sizes = [8, 32], strides = [1, 1]} : vector<8x128xf32> to vector<8x32xf32>
    %21 = arith.negf %20 : vector<8x32xf32>
    %22 = math.exp %21 : vector<8x32xf32>
    %cst_20 = arith.constant 1.000000e+00 : f32
    %23 = vector.broadcast %cst_20 : f32 to vector<8x32xf32>
    %24 = arith.addf %23, %22 : vector<8x32xf32>
    %25 = arith.divf %23, %24 : vector<8x32xf32>
    %26 = vector.extract_strided_slice %19 {offsets = [0, 32], sizes = [8, 32], strides = [1, 1]} : vector<8x128xf32> to vector<8x32xf32>
    %27 = arith.negf %26 : vector<8x32xf32>
    %28 = math.exp %27 : vector<8x32xf32>
    %cst_21 = arith.constant 1.000000e+00 : f32
    %29 = vector.broadcast %cst_21 : f32 to vector<8x32xf32>
    %30 = arith.addf %29, %28 : vector<8x32xf32>
    %31 = arith.divf %29, %30 : vector<8x32xf32>
    %32 = vector.extract_strided_slice %19 {offsets = [0, 64], sizes = [8, 32], strides = [1, 1]} : vector<8x128xf32> to vector<8x32xf32>
    %33 = math.tanh %32 : vector<8x32xf32>
    %34 = vector.extract_strided_slice %19 {offsets = [0, 96], sizes = [8, 32], strides = [1, 1]} : vector<8x128xf32> to vector<8x32xf32>
    %35 = arith.negf %34 : vector<8x32xf32>
    %36 = math.exp %35 : vector<8x32xf32>
    %cst_22 = arith.constant 1.000000e+00 : f32
    %37 = vector.broadcast %cst_22 : f32 to vector<8x32xf32>
    %38 = arith.addf %37, %36 : vector<8x32xf32>
    %39 = arith.divf %37, %38 : vector<8x32xf32>
    %40 = arith.mulf %31, %14 : vector<8x32xf32>
    %41 = arith.mulf %25, %33 : vector<8x32xf32>
    %42 = arith.addf %40, %41 : vector<8x32xf32>
    %43 = math.tanh %42 : vector<8x32xf32>
    %44 = arith.mulf %39, %43 : vector<8x32xf32>
    %45 = arith.index_cast %c0_i32_16 : i32 to index
    %c0_23 = arith.constant 0 : index
    %c0_24 = arith.constant 0 : index
    %46 = vector.load %arg6[%45, %c0_23, %c0_24] : memref<8x8x32xf32, #tpu.memory_space<vmem>>, vector<1x8x32xf32>
    %47 = vector.shape_cast %46 : vector<1x8x32xf32> to vector<8x32xf32>
    %48 = vector.shape_cast %44 : vector<8x32xf32> to vector<1x8x32xf32>
    tpu.vector_store %arg6[%45, %c0_23, %c0_24], %48 {strides = array<i32>} : memref<8x8x32xf32, #tpu.memory_space<vmem>>, vector<1x8x32xf32>,
    %c1_i32 = arith.constant 1 : i32
    %49 = arith.index_cast %c1_i32 : i32 to index
    %c0_25 = arith.constant 0 : index
    %c0_26 = arith.constant 0 : index
    %50 = vector.load %arg9[%49, %c0_25, %c0_26] : memref<8x8x128xf32, #tpu.memory_space<vmem>>, vector<1x8x128xf32>
    %51 = vector.shape_cast %50 : vector<1x8x128xf32> to vector<8x128xf32>
    %cst_27 = arith.constant dense<0.000000e+00> : vector<8x128xf32>
    %52 = tpu.matmul %44, %12, %cst_27 {dimension_numbers = #tpu.dot_dimension_numbers<[1], [0], [0], [1], [0, 0, 1, 1], [], []>} : vector<8x32xf32>, vector<32x128xf32>, vector<8x128xf32> -> vector<8x128xf32>
    %53 = arith.addf %51, %52 : vector<8x128xf32>
    %54 = vector.extract_strided_slice %53 {offsets = [0, 0], sizes = [8, 32], strides = [1, 1]} : vector<8x128xf32> to vector<8x32xf32>
    %55 = arith.negf %54 : vector<8x32xf32>
    %56 = math.exp %55 : vector<8x32xf32>
    %cst_28 = arith.constant 1.000000e+00 : f32
    %57 = vector.broadcast %cst_28 : f32 to vector<8x32xf32>
    %58 = arith.addf %57, %56 : vector<8x32xf32>
    %59 = arith.divf %57, %58 : vector<8x32xf32>
    %60 = vector.extract_strided_slice %53 {offsets = [0, 32], sizes = [8, 32], strides = [1, 1]} : vector<8x128xf32> to vector<8x32xf32>
    %61 = arith.negf %60 : vector<8x32xf32>
    %62 = math.exp %61 : vector<8x32xf32>
    %cst_29 = arith.constant 1.000000e+00 : f32
    %63 = vector.broadcast %cst_29 : f32 to vector<8x32xf32>
    %64 = arith.addf %63, %62 : vector<8x32xf32>
    %65 = arith.divf %63, %64 : vector<8x32xf32>
    %66 = vector.extract_strided_slice %53 {offsets = [0, 64], sizes = [8, 32], strides = [1, 1]} : vector<8x128xf32> to vector<8x32xf32>
    %67 = math.tanh %66 : vector<8x32xf32>
    %68 = vector.extract_strided_slice %53 {offsets = [0, 96], sizes = [8, 32], strides = [1, 1]} : vector<8x128xf32> to vector<8x32xf32>
    %69 = arith.negf %68 : vector<8x32xf32>
    %70 = math.exp %69 : vector<8x32xf32>
    %cst_30 = arith.constant 1.000000e+00 : f32
    %71 = vector.broadcast %cst_30 : f32 to vector<8x32xf32>
    %72 = arith.addf %71, %70 : vector<8x32xf32>
    %73 = arith.divf %71, %72 : vector<8x32xf32>
    %74 = arith.mulf %65, %42 : vector<8x32xf32>
    %75 = arith.mulf %59, %67 : vector<8x32xf32>
    %76 = arith.addf %74, %75 : vector<8x32xf32>
    %77 = math.tanh %76 : vector<8x32xf32>
    %78 = arith.mulf %73, %77 : vector<8x32xf32>
    %79 = arith.index_cast %c1_i32 : i32 to index
    %c0_31 = arith.constant 0 : index
    %c0_32 = arith.constant 0 : index
    %80 = vector.load %arg6[%79, %c0_31, %c0_32] : memref<8x8x32xf32, #tpu.memory_space<vmem>>, vector<1x8x32xf32>
    %81 = vector.shape_cast %80 : vector<1x8x32xf32> to vector<8x32xf32>
    %82 = vector.shape_cast %78 : vector<8x32xf32> to vector<1x8x32xf32>
    tpu.vector_store %arg6[%79, %c0_31, %c0_32], %82 {strides = array<i32>} : memref<8x8x32xf32, #tpu.memory_space<vmem>>, vector<1x8x32xf32>,
    %c2_i32 = arith.constant 2 : i32
    %83 = arith.index_cast %c2_i32 : i32 to index
    %c0_33 = arith.constant 0 : index
    %c0_34 = arith.constant 0 : index
    %84 = vector.load %arg9[%83, %c0_33, %c0_34] : memref<8x8x128xf32, #tpu.memory_space<vmem>>, vector<1x8x128xf32>
    %85 = vector.shape_cast %84 : vector<1x8x128xf32> to vector<8x128xf32>
    %cst_35 = arith.constant dense<0.000000e+00> : vector<8x128xf32>
    %86 = tpu.matmul %78, %12, %cst_35 {dimension_numbers = #tpu.dot_dimension_numbers<[1], [0], [0], [1], [0, 0, 1, 1], [], []>} : vector<8x32xf32>, vector<32x128xf32>, vector<8x128xf32> -> vector<8x128xf32>
    %87 = arith.addf %85, %86 : vector<8x128xf32>
    %88 = vector.extract_strided_slice %87 {offsets = [0, 0], sizes = [8, 32], strides = [1, 1]} : vector<8x128xf32> to vector<8x32xf32>
    %89 = arith.negf %88 : vector<8x32xf32>
    %90 = math.exp %89 : vector<8x32xf32>
    %cst_36 = arith.constant 1.000000e+00 : f32
    %91 = vector.broadcast %cst_36 : f32 to vector<8x32xf32>
    %92 = arith.addf %91, %90 : vector<8x32xf32>
    %93 = arith.divf %91, %92 : vector<8x32xf32>
    %94 = vector.extract_strided_slice %87 {offsets = [0, 32], sizes = [8, 32], strides = [1, 1]} : vector<8x128xf32> to vector<8x32xf32>
    %95 = arith.negf %94 : vector<8x32xf32>
    %96 = math.exp %95 : vector<8x32xf32>
    %cst_37 = arith.constant 1.000000e+00 : f32
    %97 = vector.broadcast %cst_37 : f32 to vector<8x32xf32>
    %98 = arith.addf %97, %96 : vector<8x32xf32>
    %99 = arith.divf %97, %98 : vector<8x32xf32>
    %100 = vector.extract_strided_slice %87 {offsets = [0, 64], sizes = [8, 32], strides = [1, 1]} : vector<8x128xf32> to vector<8x32xf32>
    %101 = math.tanh %100 : vector<8x32xf32>
    %102 = vector.extract_strided_slice %87 {offsets = [0, 96], sizes = [8, 32], strides = [1, 1]} : vector<8x128xf32> to vector<8x32xf32>
    %103 = arith.negf %102 : vector<8x32xf32>
    %104 = math.exp %103 : vector<8x32xf32>
    %cst_38 = arith.constant 1.000000e+00 : f32
    %105 = vector.broadcast %cst_38 : f32 to vector<8x32xf32>
    %106 = arith.addf %105, %104 : vector<8x32xf32>
    %107 = arith.divf %105, %106 : vector<8x32xf32>
    %108 = arith.mulf %99, %76 : vector<8x32xf32>
    %109 = arith.mulf %93, %101 : vector<8x32xf32>
    %110 = arith.addf %108, %109 : vector<8x32xf32>
    %111 = math.tanh %110 : vector<8x32xf32>
    %112 = arith.mulf %107, %111 : vector<8x32xf32>
    %113 = arith.index_cast %c2_i32 : i32 to index
    %c0_39 = arith.constant 0 : index
    %c0_40 = arith.constant 0 : index
    %114 = vector.load %arg6[%113, %c0_39, %c0_40] : memref<8x8x32xf32, #tpu.memory_space<vmem>>, vector<1x8x32xf32>
    %115 = vector.shape_cast %114 : vector<1x8x32xf32> to vector<8x32xf32>
    %116 = vector.shape_cast %112 : vector<8x32xf32> to vector<1x8x32xf32>
    tpu.vector_store %arg6[%113, %c0_39, %c0_40], %116 {strides = array<i32>} : memref<8x8x32xf32, #tpu.memory_space<vmem>>, vector<1x8x32xf32>,
    %c3_i32 = arith.constant 3 : i32
    %117 = arith.index_cast %c3_i32 : i32 to index
    %c0_41 = arith.constant 0 : index
    %c0_42 = arith.constant 0 : index
    %118 = vector.load %arg9[%117, %c0_41, %c0_42] : memref<8x8x128xf32, #tpu.memory_space<vmem>>, vector<1x8x128xf32>
    %119 = vector.shape_cast %118 : vector<1x8x128xf32> to vector<8x128xf32>
    %cst_43 = arith.constant dense<0.000000e+00> : vector<8x128xf32>
    %120 = tpu.matmul %112, %12, %cst_43 {dimension_numbers = #tpu.dot_dimension_numbers<[1], [0], [0], [1], [0, 0, 1, 1], [], []>} : vector<8x32xf32>, vector<32x128xf32>, vector<8x128xf32> -> vector<8x128xf32>
    %121 = arith.addf %119, %120 : vector<8x128xf32>
    %122 = vector.extract_strided_slice %121 {offsets = [0, 0], sizes = [8, 32], strides = [1, 1]} : vector<8x128xf32> to vector<8x32xf32>
    %123 = arith.negf %122 : vector<8x32xf32>
    %124 = math.exp %123 : vector<8x32xf32>
    %cst_44 = arith.constant 1.000000e+00 : f32
    %125 = vector.broadcast %cst_44 : f32 to vector<8x32xf32>
    %126 = arith.addf %125, %124 : vector<8x32xf32>
    %127 = arith.divf %125, %126 : vector<8x32xf32>
    %128 = vector.extract_strided_slice %121 {offsets = [0, 32], sizes = [8, 32], strides = [1, 1]} : vector<8x128xf32> to vector<8x32xf32>
    %129 = arith.negf %128 : vector<8x32xf32>
    %130 = math.exp %129 : vector<8x32xf32>
    %cst_45 = arith.constant 1.000000e+00 : f32
    %131 = vector.broadcast %cst_45 : f32 to vector<8x32xf32>
    %132 = arith.addf %131, %130 : vector<8x32xf32>
    %133 = arith.divf %131, %132 : vector<8x32xf32>
    %134 = vector.extract_strided_slice %121 {offsets = [0, 64], sizes = [8, 32], strides = [1, 1]} : vector<8x128xf32> to vector<8x32xf32>
    %135 = math.tanh %134 : vector<8x32xf32>
    %136 = vector.extract_strided_slice %121 {offsets = [0, 96], sizes = [8, 32], strides = [1, 1]} : vector<8x128xf32> to vector<8x32xf32>
    %137 = arith.negf %136 : vector<8x32xf32>
    %138 = math.exp %137 : vector<8x32xf32>
    %cst_46 = arith.constant 1.000000e+00 : f32
    %139 = vector.broadcast %cst_46 : f32 to vector<8x32xf32>
    %140 = arith.addf %139, %138 : vector<8x32xf32>
    %141 = arith.divf %139, %140 : vector<8x32xf32>
    %142 = arith.mulf %133, %110 : vector<8x32xf32>
    %143 = arith.mulf %127, %135 : vector<8x32xf32>
    %144 = arith.addf %142, %143 : vector<8x32xf32>
    %145 = math.tanh %144 : vector<8x32xf32>
    %146 = arith.mulf %141, %145 : vector<8x32xf32>
    %147 = arith.index_cast %c3_i32 : i32 to index
    %c0_47 = arith.constant 0 : index
    %c0_48 = arith.constant 0 : index
    %148 = vector.load %arg6[%147, %c0_47, %c0_48] : memref<8x8x32xf32, #tpu.memory_space<vmem>>, vector<1x8x32xf32>
    %149 = vector.shape_cast %148 : vector<1x8x32xf32> to vector<8x32xf32>
    %150 = vector.shape_cast %146 : vector<8x32xf32> to vector<1x8x32xf32>
    tpu.vector_store %arg6[%147, %c0_47, %c0_48], %150 {strides = array<i32>} : memref<8x8x32xf32, #tpu.memory_space<vmem>>, vector<1x8x32xf32>,
    %c4_i32 = arith.constant 4 : i32
    %151 = arith.index_cast %c4_i32 : i32 to index
    %c0_49 = arith.constant 0 : index
    %c0_50 = arith.constant 0 : index
    %152 = vector.load %arg9[%151, %c0_49, %c0_50] : memref<8x8x128xf32, #tpu.memory_space<vmem>>, vector<1x8x128xf32>
    %153 = vector.shape_cast %152 : vector<1x8x128xf32> to vector<8x128xf32>
    %cst_51 = arith.constant dense<0.000000e+00> : vector<8x128xf32>
    %154 = tpu.matmul %146, %12, %cst_51 {dimension_numbers = #tpu.dot_dimension_numbers<[1], [0], [0], [1], [0, 0, 1, 1], [], []>} : vector<8x32xf32>, vector<32x128xf32>, vector<8x128xf32> -> vector<8x128xf32>
    %155 = arith.addf %153, %154 : vector<8x128xf32>
    %156 = vector.extract_strided_slice %155 {offsets = [0, 0], sizes = [8, 32], strides = [1, 1]} : vector<8x128xf32> to vector<8x32xf32>
    %157 = arith.negf %156 : vector<8x32xf32>
    %158 = math.exp %157 : vector<8x32xf32>
    %cst_52 = arith.constant 1.000000e+00 : f32
    %159 = vector.broadcast %cst_52 : f32 to vector<8x32xf32>
    %160 = arith.addf %159, %158 : vector<8x32xf32>
    %161 = arith.divf %159, %160 : vector<8x32xf32>
    %162 = vector.extract_strided_slice %155 {offsets = [0, 32], sizes = [8, 32], strides = [1, 1]} : vector<8x128xf32> to vector<8x32xf32>
    %163 = arith.negf %162 : vector<8x32xf32>
    %164 = math.exp %163 : vector<8x32xf32>
    %cst_53 = arith.constant 1.000000e+00 : f32
    %165 = vector.broadcast %cst_53 : f32 to vector<8x32xf32>
    %166 = arith.addf %165, %164 : vector<8x32xf32>
    %167 = arith.divf %165, %166 : vector<8x32xf32>
    %168 = vector.extract_strided_slice %155 {offsets = [0, 64], sizes = [8, 32], strides = [1, 1]} : vector<8x128xf32> to vector<8x32xf32>
    %169 = math.tanh %168 : vector<8x32xf32>
    %170 = vector.extract_strided_slice %155 {offsets = [0, 96], sizes = [8, 32], strides = [1, 1]} : vector<8x128xf32> to vector<8x32xf32>
    %171 = arith.negf %170 : vector<8x32xf32>
    %172 = math.exp %171 : vector<8x32xf32>
    %cst_54 = arith.constant 1.000000e+00 : f32
    %173 = vector.broadcast %cst_54 : f32 to vector<8x32xf32>
    %174 = arith.addf %173, %172 : vector<8x32xf32>
    %175 = arith.divf %173, %174 : vector<8x32xf32>
    %176 = arith.mulf %167, %144 : vector<8x32xf32>
    %177 = arith.mulf %161, %169 : vector<8x32xf32>
    %178 = arith.addf %176, %177 : vector<8x32xf32>
    %179 = math.tanh %178 : vector<8x32xf32>
    %180 = arith.mulf %175, %179 : vector<8x32xf32>
    %181 = arith.index_cast %c4_i32 : i32 to index
    %c0_55 = arith.constant 0 : index
    %c0_56 = arith.constant 0 : index
    %182 = vector.load %arg6[%181, %c0_55, %c0_56] : memref<8x8x32xf32, #tpu.memory_space<vmem>>, vector<1x8x32xf32>
    %183 = vector.shape_cast %182 : vector<1x8x32xf32> to vector<8x32xf32>
    %184 = vector.shape_cast %180 : vector<8x32xf32> to vector<1x8x32xf32>
    tpu.vector_store %arg6[%181, %c0_55, %c0_56], %184 {strides = array<i32>} : memref<8x8x32xf32, #tpu.memory_space<vmem>>, vector<1x8x32xf32>,
    %c5_i32 = arith.constant 5 : i32
    %185 = arith.index_cast %c5_i32 : i32 to index
    %c0_57 = arith.constant 0 : index
    %c0_58 = arith.constant 0 : index
    %186 = vector.load %arg9[%185, %c0_57, %c0_58] : memref<8x8x128xf32, #tpu.memory_space<vmem>>, vector<1x8x128xf32>
    %187 = vector.shape_cast %186 : vector<1x8x128xf32> to vector<8x128xf32>
    %cst_59 = arith.constant dense<0.000000e+00> : vector<8x128xf32>
    %188 = tpu.matmul %180, %12, %cst_59 {dimension_numbers = #tpu.dot_dimension_numbers<[1], [0], [0], [1], [0, 0, 1, 1], [], []>} : vector<8x32xf32>, vector<32x128xf32>, vector<8x128xf32> -> vector<8x128xf32>
    %189 = arith.addf %187, %188 : vector<8x128xf32>
    %190 = vector.extract_strided_slice %189 {offsets = [0, 0], sizes = [8, 32], strides = [1, 1]} : vector<8x128xf32> to vector<8x32xf32>
    %191 = arith.negf %190 : vector<8x32xf32>
    %192 = math.exp %191 : vector<8x32xf32>
    %cst_60 = arith.constant 1.000000e+00 : f32
    %193 = vector.broadcast %cst_60 : f32 to vector<8x32xf32>
    %194 = arith.addf %193, %192 : vector<8x32xf32>
    %195 = arith.divf %193, %194 : vector<8x32xf32>
    %196 = vector.extract_strided_slice %189 {offsets = [0, 32], sizes = [8, 32], strides = [1, 1]} : vector<8x128xf32> to vector<8x32xf32>
    %197 = arith.negf %196 : vector<8x32xf32>
    %198 = math.exp %197 : vector<8x32xf32>
    %cst_61 = arith.constant 1.000000e+00 : f32
    %199 = vector.broadcast %cst_61 : f32 to vector<8x32xf32>
    %200 = arith.addf %199, %198 : vector<8x32xf32>
    %201 = arith.divf %199, %200 : vector<8x32xf32>
    %202 = vector.extract_strided_slice %189 {offsets = [0, 64], sizes = [8, 32], strides = [1, 1]} : vector<8x128xf32> to vector<8x32xf32>
    %203 = math.tanh %202 : vector<8x32xf32>
    %204 = vector.extract_strided_slice %189 {offsets = [0, 96], sizes = [8, 32], strides = [1, 1]} : vector<8x128xf32> to vector<8x32xf32>
    %205 = arith.negf %204 : vector<8x32xf32>
    %206 = math.exp %205 : vector<8x32xf32>
    %cst_62 = arith.constant 1.000000e+00 : f32
    %207 = vector.broadcast %cst_62 : f32 to vector<8x32xf32>
    %208 = arith.addf %207, %206 : vector<8x32xf32>
    %209 = arith.divf %207, %208 : vector<8x32xf32>
    %210 = arith.mulf %201, %178 : vector<8x32xf32>
    %211 = arith.mulf %195, %203 : vector<8x32xf32>
    %212 = arith.addf %210, %211 : vector<8x32xf32>
    %213 = math.tanh %212 : vector<8x32xf32>
    %214 = arith.mulf %209, %213 : vector<8x32xf32>
    %215 = arith.index_cast %c5_i32 : i32 to index
    %c0_63 = arith.constant 0 : index
    %c0_64 = arith.constant 0 : index
    %216 = vector.load %arg6[%215, %c0_63, %c0_64] : memref<8x8x32xf32, #tpu.memory_space<vmem>>, vector<1x8x32xf32>
    %217 = vector.shape_cast %216 : vector<1x8x32xf32> to vector<8x32xf32>
    %218 = vector.shape_cast %214 : vector<8x32xf32> to vector<1x8x32xf32>
    tpu.vector_store %arg6[%215, %c0_63, %c0_64], %218 {strides = array<i32>} : memref<8x8x32xf32, #tpu.memory_space<vmem>>, vector<1x8x32xf32>,
    %c6_i32 = arith.constant 6 : i32
    %219 = arith.index_cast %c6_i32 : i32 to index
    %c0_65 = arith.constant 0 : index
    %c0_66 = arith.constant 0 : index
    %220 = vector.load %arg9[%219, %c0_65, %c0_66] : memref<8x8x128xf32, #tpu.memory_space<vmem>>, vector<1x8x128xf32>
    %221 = vector.shape_cast %220 : vector<1x8x128xf32> to vector<8x128xf32>
    %cst_67 = arith.constant dense<0.000000e+00> : vector<8x128xf32>
    %222 = tpu.matmul %214, %12, %cst_67 {dimension_numbers = #tpu.dot_dimension_numbers<[1], [0], [0], [1], [0, 0, 1, 1], [], []>} : vector<8x32xf32>, vector<32x128xf32>, vector<8x128xf32> -> vector<8x128xf32>
    %223 = arith.addf %221, %222 : vector<8x128xf32>
    %224 = vector.extract_strided_slice %223 {offsets = [0, 0], sizes = [8, 32], strides = [1, 1]} : vector<8x128xf32> to vector<8x32xf32>
    %225 = arith.negf %224 : vector<8x32xf32>
    %226 = math.exp %225 : vector<8x32xf32>
    %cst_68 = arith.constant 1.000000e+00 : f32
    %227 = vector.broadcast %cst_68 : f32 to vector<8x32xf32>
    %228 = arith.addf %227, %226 : vector<8x32xf32>
    %229 = arith.divf %227, %228 : vector<8x32xf32>
    %230 = vector.extract_strided_slice %223 {offsets = [0, 32], sizes = [8, 32], strides = [1, 1]} : vector<8x128xf32> to vector<8x32xf32>
    %231 = arith.negf %230 : vector<8x32xf32>
    %232 = math.exp %231 : vector<8x32xf32>
    %cst_69 = arith.constant 1.000000e+00 : f32
    %233 = vector.broadcast %cst_69 : f32 to vector<8x32xf32>
    %234 = arith.addf %233, %232 : vector<8x32xf32>
    %235 = arith.divf %233, %234 : vector<8x32xf32>
    %236 = vector.extract_strided_slice %223 {offsets = [0, 64], sizes = [8, 32], strides = [1, 1]} : vector<8x128xf32> to vector<8x32xf32>
    %237 = math.tanh %236 : vector<8x32xf32>
    %238 = vector.extract_strided_slice %223 {offsets = [0, 96], sizes = [8, 32], strides = [1, 1]} : vector<8x128xf32> to vector<8x32xf32>
    %239 = arith.negf %238 : vector<8x32xf32>
    %240 = math.exp %239 : vector<8x32xf32>
    %cst_70 = arith.constant 1.000000e+00 : f32
    %241 = vector.broadcast %cst_70 : f32 to vector<8x32xf32>
    %242 = arith.addf %241, %240 : vector<8x32xf32>
    %243 = arith.divf %241, %242 : vector<8x32xf32>
    %244 = arith.mulf %235, %212 : vector<8x32xf32>
    %245 = arith.mulf %229, %237 : vector<8x32xf32>
    %246 = arith.addf %244, %245 : vector<8x32xf32>
    %247 = math.tanh %246 : vector<8x32xf32>
    %248 = arith.mulf %243, %247 : vector<8x32xf32>
    %249 = arith.index_cast %c6_i32 : i32 to index
    %c0_71 = arith.constant 0 : index
    %c0_72 = arith.constant 0 : index
    %250 = vector.load %arg6[%249, %c0_71, %c0_72] : memref<8x8x32xf32, #tpu.memory_space<vmem>>, vector<1x8x32xf32>
    %251 = vector.shape_cast %250 : vector<1x8x32xf32> to vector<8x32xf32>
    %252 = vector.shape_cast %248 : vector<8x32xf32> to vector<1x8x32xf32>
    tpu.vector_store %arg6[%249, %c0_71, %c0_72], %252 {strides = array<i32>} : memref<8x8x32xf32, #tpu.memory_space<vmem>>, vector<1x8x32xf32>,
    %c7_i32 = arith.constant 7 : i32
    %253 = arith.index_cast %c7_i32 : i32 to index
    %c0_73 = arith.constant 0 : index
    %c0_74 = arith.constant 0 : index
    %254 = vector.load %arg9[%253, %c0_73, %c0_74] : memref<8x8x128xf32, #tpu.memory_space<vmem>>, vector<1x8x128xf32>
    %255 = vector.shape_cast %254 : vector<1x8x128xf32> to vector<8x128xf32>
    %cst_75 = arith.constant dense<0.000000e+00> : vector<8x128xf32>
    %256 = tpu.matmul %248, %12, %cst_75 {dimension_numbers = #tpu.dot_dimension_numbers<[1], [0], [0], [1], [0, 0, 1, 1], [], []>} : vector<8x32xf32>, vector<32x128xf32>, vector<8x128xf32> -> vector<8x128xf32>
    %257 = arith.addf %255, %256 : vector<8x128xf32>
    %258 = vector.extract_strided_slice %257 {offsets = [0, 0], sizes = [8, 32], strides = [1, 1]} : vector<8x128xf32> to vector<8x32xf32>
    %259 = arith.negf %258 : vector<8x32xf32>
    %260 = math.exp %259 : vector<8x32xf32>
    %cst_76 = arith.constant 1.000000e+00 : f32
    %261 = vector.broadcast %cst_76 : f32 to vector<8x32xf32>
    %262 = arith.addf %261, %260 : vector<8x32xf32>
    %263 = arith.divf %261, %262 : vector<8x32xf32>
    %264 = vector.extract_strided_slice %257 {offsets = [0, 32], sizes = [8, 32], strides = [1, 1]} : vector<8x128xf32> to vector<8x32xf32>
    %265 = arith.negf %264 : vector<8x32xf32>
    %266 = math.exp %265 : vector<8x32xf32>
    %cst_77 = arith.constant 1.000000e+00 : f32
    %267 = vector.broadcast %cst_77 : f32 to vector<8x32xf32>
    %268 = arith.addf %267, %266 : vector<8x32xf32>
    %269 = arith.divf %267, %268 : vector<8x32xf32>
    %270 = vector.extract_strided_slice %257 {offsets = [0, 64], sizes = [8, 32], strides = [1, 1]} : vector<8x128xf32> to vector<8x32xf32>
    %271 = math.tanh %270 : vector<8x32xf32>
    %272 = vector.extract_strided_slice %257 {offsets = [0, 96], sizes = [8, 32], strides = [1, 1]} : vector<8x128xf32> to vector<8x32xf32>
    %273 = arith.negf %272 : vector<8x32xf32>
    %274 = math.exp %273 : vector<8x32xf32>
    %cst_78 = arith.constant 1.000000e+00 : f32
    %275 = vector.broadcast %cst_78 : f32 to vector<8x32xf32>
    %276 = arith.addf %275, %274 : vector<8x32xf32>
    %277 = arith.divf %275, %276 : vector<8x32xf32>
    %278 = arith.mulf %269, %246 : vector<8x32xf32>
    %279 = arith.mulf %263, %271 : vector<8x32xf32>
    %280 = arith.addf %278, %279 : vector<8x32xf32>
    %281 = math.tanh %280 : vector<8x32xf32>
    %282 = arith.mulf %277, %281 : vector<8x32xf32>
    %283 = arith.index_cast %c7_i32 : i32 to index
    %c0_79 = arith.constant 0 : index
    %c0_80 = arith.constant 0 : index
    %284 = vector.load %arg6[%283, %c0_79, %c0_80] : memref<8x8x32xf32, #tpu.memory_space<vmem>>, vector<1x8x32xf32>
    %285 = vector.shape_cast %284 : vector<1x8x32xf32> to vector<8x32xf32>
    %286 = vector.shape_cast %282 : vector<8x32xf32> to vector<1x8x32xf32>
    tpu.vector_store %arg6[%283, %c0_79, %c0_80], %286 {strides = array<i32>} : memref<8x8x32xf32, #tpu.memory_space<vmem>>, vector<1x8x32xf32>,
    %c8_i32 = arith.constant 8 : i32
    %c0_81 = arith.constant 0 : index
    %c0_82 = arith.constant 0 : index
    %287 = vector.load %arg7[%c0_81, %c0_82] : memref<8x32xf32, #tpu.memory_space<vmem>>, vector<8x32xf32>
    tpu.vector_store %arg7[%c0_81, %c0_82], %282 {strides = array<i32>} : memref<8x32xf32, #tpu.memory_space<vmem>>, vector<8x32xf32>,
    %c0_83 = arith.constant 0 : index
    %c0_84 = arith.constant 0 : index
    %288 = vector.load %arg8[%c0_83, %c0_84] : memref<8x32xf32, #tpu.memory_space<vmem>>, vector<8x32xf32>
    tpu.vector_store %arg8[%c0_83, %c0_84], %280 {strides = array<i32>} : memref<8x32xf32, #tpu.memory_space<vmem>>, vector<8x32xf32>,
    return
  }
  func.func @transform_0(%arg0: i32, %arg1: i32) -> (i32, i32, i32) {
    %c0_i32 = arith.constant 0 : i32
    %c0_i32_0 = arith.constant 0 : i32
    return %arg1, %arg0, %c0_i32 : i32, i32, i32
  }
  func.func @transform_1(%arg0: i32, %arg1: i32) -> (i32, i32) {
    %c0_i32 = arith.constant 0 : i32
    %c0_i32_0 = arith.constant 0 : i32
    %c0_i32_1 = arith.constant 0 : i32
    return %c0_i32, %c0_i32_0 : i32, i32
  }
  func.func @transform_2(%arg0: i32, %arg1: i32) -> (i32, i32) {
    %c0_i32 = arith.constant 0 : i32
    %c0_i32_0 = arith.constant 0 : i32
    %c0_i32_1 = arith.constant 0 : i32
    return %c0_i32, %c0_i32_0 : i32, i32
  }
  func.func @transform_3(%arg0: i32, %arg1: i32) -> (i32, i32) {
    %c0_i32 = arith.constant 0 : i32
    %c0_i32_0 = arith.constant 0 : i32
    %c0_i32_1 = arith.constant 0 : i32
    return %c0_i32, %c0_i32_0 : i32, i32
  }
  func.func @transform_4(%arg0: i32, %arg1: i32) -> (i32, i32, i32) {
    %c0_i32 = arith.constant 0 : i32
    %c0_i32_0 = arith.constant 0 : i32
    return %arg1, %arg0, %c0_i32 : i32, i32, i32
  }
}

module attributes {stable_mosaic.version = 11 : i64} {
  func.func @_classifier_kernel(%arg0: i32, %arg1: memref<8x32xf32, #tpu.memory_space<vmem>>, %arg2: memref<32x8xf32, #tpu.memory_space<vmem>>, %arg3: memref<1x8xf32, #tpu.memory_space<vmem>>, %arg4: memref<8x8xf32, #tpu.memory_space<vmem>>) attributes {dimension_semantics = [#tpu.dimension_semantics<parallel>], iteration_bounds = array<i64: 1>, scalar_prefetch = 0 : i64, scratch_operands = 0 : i64, tpu.core_type = #tpu.core_type<tc>, window_params = [{pipeline_mode = #tpu.pipeline_mode<synchronous>, transform_indices = @transform_0, window_bounds = array<i64: 8, 32>}, {transform_indices = @transform_1, window_bounds = array<i64: 32, 8>}, {transform_indices = @transform_2, window_bounds = array<i64: 1, 8>}, {transform_indices = @transform_3, window_bounds = array<i64: 8, 8>}]} {
    %c0 = arith.constant 0 : index
    %c0_0 = arith.constant 0 : index
    %0 = vector.load %arg1[%c0, %c0_0] : memref<8x32xf32, #tpu.memory_space<vmem>>, vector<8x32xf32>
    %c0_1 = arith.constant 0 : index
    %c0_2 = arith.constant 0 : index
    %1 = vector.load %arg2[%c0_1, %c0_2] : memref<32x8xf32, #tpu.memory_space<vmem>>, vector<32x8xf32>
    %cst = arith.constant dense<0.000000e+00> : vector<8x8xf32>
    %2 = tpu.matmul %0, %1, %cst {dimension_numbers = #tpu.dot_dimension_numbers<[1], [0], [0], [1], [0, 0, 1, 1], [], []>} : vector<8x32xf32>, vector<32x8xf32>, vector<8x8xf32> -> vector<8x8xf32>
    %c0_3 = arith.constant 0 : index
    %c0_4 = arith.constant 0 : index
    %3 = vector.load %arg3[%c0_3, %c0_4] : memref<1x8xf32, #tpu.memory_space<vmem>>, vector<1x8xf32>
    %4 = vector.broadcast %3 : vector<1x8xf32> to vector<8x8xf32>
    %5 = arith.addf %2, %4 : vector<8x8xf32>
    %c0_5 = arith.constant 0 : index
    %c0_6 = arith.constant 0 : index
    %6 = vector.load %arg4[%c0_5, %c0_6] : memref<8x8xf32, #tpu.memory_space<vmem>>, vector<8x8xf32>
    tpu.vector_store %arg4[%c0_5, %c0_6], %5 {strides = array<i32>} : memref<8x8xf32, #tpu.memory_space<vmem>>, vector<8x8xf32>,
    return
  }
  func.func @transform_0(%arg0: i32) -> (i32, i32) {
    %c0_i32 = arith.constant 0 : i32
    %c0_i32_0 = arith.constant 0 : i32
    %c0_i32_1 = arith.constant 0 : i32
    return %c0_i32, %c0_i32_0 : i32, i32
  }
  func.func @transform_1(%arg0: i32) -> (i32, i32) {
    %c0_i32 = arith.constant 0 : i32
    %c0_i32_0 = arith.constant 0 : i32
    return %c0_i32, %arg0 : i32, i32
  }
  func.func @transform_2(%arg0: i32) -> (i32, i32) {
    %c0_i32 = arith.constant 0 : i32
    %c0_i32_0 = arith.constant 0 : i32
    return %c0_i32, %arg0 : i32, i32
  }
  func.func @transform_3(%arg0: i32) -> (i32, i32) {
    %c0_i32 = arith.constant 0 : i32
    %c0_i32_0 = arith.constant 0 : i32
    return %c0_i32, %arg0 : i32, i32
  }
}

</mosaic_0001>

<bundles_post_ra>
// kernel: lstm_model_forward.5
= control target key start
LH: loop header
LB: loop body
LE: loop exit
PB: predicated region body
PF: predicated region fallthrough
CT: control target
= control target key end

     0   :  { %v126_v0 = vmov 0.0   ;;  %vm127_vm0 = vmmov 0   ;;  %vm26_vm1 = vcmask 261120   ;;  %vm100_vm2 = vcmask 64512   ;;  %s169_s1 = inlined_call_operand.vmem [shape: f32[32,8], index: 1, kind: input, shape index: {}]   ;;  %s170_s0 = inlined_call_operand.vmem [shape: f32[8,32], index: 0, kind: input, shape index: {}]   ;;  %s171_s2 = inlined_call_operand.vmem [shape: f32[1,8], index: 2, kind: input, shape index: {}]   ;;  %s172_s3 = inlined_call_operand.vmem [shape: f32[8,8], index: 3, kind: output, shape index: {}]  }
   0x1   :  { %113 = vmatprep.subr.mxu0 %v126_v0  ;;  %v18_v1 = vld [vmem:[%s169_s1 + $0x18] sm:$0xff]  ;;  %v17_v2 = vld [vmem:[%s169_s1 + $0x10] sm:$0xff]  ;;  %121 = vmatprep.mubr.msk.f32.mxu0 %vm127_vm0, %v126_v0  ;;  %v16_v3 = vld [vmem:[%s169_s1 + $0x8] sm:$0xff] }
   0x2   :  { %114 = vmatpush3.msra.mxu0 %v18_v1  ;;  %v15_v4 = vld [vmem:[%s169_s1] sm:$0xff] }
   0x3   :  { %115 = vmatprep.subr.mxu0 %v126_v0  ;;  %v14_v5 = vld [vmem:[%s170_s0] sm:$0xff] }
   0x4   :  { %116 = vmatpush3.msra.mxu0 %v17_v2  ;;  %v106_v6 = vld [vmem:[%s171_s2] ss:$0 sm:$0xff] }
   0x5   :  { %117 = vmatprep.subr.mxu0 %v126_v0 }
   0x6   :  { %118 = vmatpush3.msra.mxu0 %v16_v3 }
   0x7   :  { %119 = vmatprep.subr.mxu0 %v126_v0 }
   0x8   :  { %120 = vmatpush3.msra.mxu0 %v15_v4 }
   0x9   :  { %122 = vmatmul.mubr.msk.f32.vlgmr.msra.gmra.mxu0 %vm26_vm1, %v14_v5 }
  0xc9   :  { %v96_v7 = vpop.f32.mrf.mxu0 }
  0xca   :  { %v97_v8 = vadd.f32 %v106_v6, %v96_v7 }
  0xcb   :  { %v123_v9 = vpop.f32.mrf.mxu0 }
  0xcc   :  { %101 = vst.msk [vmem:[%s172_s3] sm:$0xff] %vm100_vm2, %v97_v8 }

// kernel: lstm_model_forward.4
= control target key start
LH: loop header
LB: loop body
LE: loop exit
PB: predicated region body
PF: predicated region fallthrough
CT: control target
= control target key end

     0   :  { %vm21_vm0 = vcmask 261120   ;;  %v1276_v2 = vmov 0.0   ;;  %vm1277_vm1 = vmmov 0   ;;  %s1278_s9 = smov 64   ;;  %s1279_s10 = smov 32   ;;  %s1526_s1 = inlined_call_operand.vmem [shape: f32[32,128], index: 1, kind: input, shape index: {}]   ;;  %s1527_s2 = inlined_call_operand.vmem [shape: f32[32,128], index: 2, kind: input, shape index: {}]   ;;  %s1528_s0 = inlined_call_operand.vmem [shape: f32[8,8,32], index: 0, kind: input, shape index: {}]   ;;  %s1529_s3 = inlined_call_operand.vmem [shape: f32[1,128], index: 3, kind: input, shape index: {}]   ;;  %s1530_s4 = inlined_call_operand.vmem [shape: f32[8,32], index: 4, kind: output, shape index: {}]  }
   0x1   :  { %v35_v0 = vld [vmem:[%s1526_s1 + $0x18] sm:$0xff]  ;;  %v34_v1 = vld [vmem:[%s1526_s1 + $0x10] sm:$0xff]  ;;  %1119 = vmatprep.subr.mxu1 %v1276_v2  ;;  %22 = vst.msk [vmem:[#allocation2] sm:$0xff] %vm21_vm0, %v1276_v2  ;;  %23 = vst.msk [vmem:[#allocation3] sm:$0xff] %vm21_vm0, %v1276_v2  ;;  %1127 = vmatprep.mubr.msk.f32.mxu1 %vm1277_vm1, %v1276_v2 }
   0x2   :  { %v1316_v3 = vld [vmem:[%s1527_s2 + $0x18] sm:$0xff]  ;;  %1099 = vmatprep.subr.mxu0 %v35_v0  ;;  %v1328_v4 = vld [vmem:[%s1527_s2 + $0x10] sm:$0xff]  ;;  %v33_v5 = vld [vmem:[%s1526_s1 + $0x8] sm:$0xff] }
   0x3   :  { %1120 = vmatpush3.msra.mxu1 %v1316_v3  ;;  %1100 = vmatpush3.msra.mxu0 %v35_v0  ;;  %v24_v6 = vld [vmem:[%s1528_s0] sm:$0xff]  ;;  %v1341_v7 = vld [vmem:[%s1527_s2 + $0x8] sm:$0xff]  ;;  %v26_v49 = vld [vmem:[%s1528_s0 + $0x10] sm:$0xff] }
   0x4   :  { %1121 = vmatprep.subr.mxu1 %v1276_v2  ;;  %1101 = vmatprep.subr.mxu0 %v34_v1  ;;  %v32_v8 = vld [vmem:[%s1526_s1] sm:$0xff]  ;;  %v25_v10 = vld [vmem:[%s1528_s0 + $0x8] sm:$0xff]  ;;  %v27_v50 = vld [vmem:[%s1528_s0 + $0x18] sm:$0xff] }
   0x5   :  { %1122 = vmatpush3.msra.mxu1 %v1328_v4  ;;  %1102 = vmatpush3.msra.mxu0 %v34_v1  ;;  %v1351_v9 = vld [vmem:[%s1527_s2] sm:$0xff]  ;;  %v29_v52 = vld [vmem:[%s1528_s0 + $0x28] sm:$0xff]  ;;  %v30_v53 = vld [vmem:[%s1528_s0 + $0x30] sm:$0xff] }
   0x6   :  { %1123 = vmatprep.subr.mxu1 %v1276_v2  ;;  %1103 = vmatprep.subr.mxu0 %v33_v5  ;;  %v1384_v14 = vld [vmem:[%s1529_s3] ss:$0 sm:$0xff]  ;;  %v31_v54 = vld [vmem:[%s1528_s0 + $0x38] sm:$0xff] }
   0x7   :  { %1107 = vmatprep.mubr.msk.f32.mxu0 %vm21_vm0, %v24_v6  ;;  %1104 = vmatpush3.msra.mxu0 %v33_v5  ;;  %v28_v51 = vld [vmem:[%s1528_s0 + $0x20] sm:$0xff]  ;;  %s1280_s0 = smov 96  }
   0x8   :  { %1124 = vmatpush3.msra.mxu1 %v1341_v7  ;;  %1105 = vmatprep.subr.mxu0 %v32_v8  ;;  %v185_v11 = vld [vmem:[#allocation2] sm:$0xff]  ;;  %v186_v20 = vld [vmem:[#allocation3] sm:$0xff] }
   0x9   :  { %1125 = vmatprep.subr.mxu1 %v1276_v2  ;;  %1106 = vmatpush3.msra.mxu0 %v32_v8 }
   0xa   :  { %1126 = vmatpush3.msra.mxu1 %v1351_v9  ;;  %1108 = vmatmul.mubr.msk.f32.vlgmr.msra.gmra.mxu0 %vm21_vm0, %v25_v10 }
   0xb   :  { %1128 = vmatmul.mubr.msk.f32.vlgmr.msra.gmra.mxu1 %vm21_vm0, %v185_v11  ;;  %1130 = vmatprep.subr.mxu1 %v1276_v2 }
   0xc   :  { %1138 = vmatprep.mubr.msk.f32.mxu1 %vm1277_vm1, %v1276_v2  ;;  %1131 = vmatpush3.msra.mxu1 %v1316_v3 }
   0xd   :  { %1141 = vmatprep.subr.mxu0 %v1276_v2  ;;  %1132 = vmatprep.subr.mxu1 %v1276_v2 }
   0xe   :  { %1142 = vmatpush3.msra.mxu0 %v1316_v3  ;;  %1133 = vmatpush3.msra.mxu1 %v1328_v4 }
   0xf   :  { %1143 = vmatprep.subr.mxu0 %v1276_v2  ;;  %1134 = vmatprep.subr.mxu1 %v1276_v2 }
  0x10   :  { %1144 = vmatpush3.msra.mxu0 %v1328_v4  ;;  %1135 = vmatpush3.msra.mxu1 %v1341_v7 }
  0x11   :  { %1145 = vmatprep.subr.mxu0 %v1276_v2  ;;  %1136 = vmatprep.subr.mxu1 %v1276_v2 }
  0x12   :  { %1146 = vmatpush3.msra.mxu0 %v1341_v7  ;;  %1137 = vmatpush3.msra.mxu1 %v1351_v9 }
  0x13   :  { %1147 = vmatprep.subr.mxu0 %v1276_v2  ;;  %1152 = vmatprep.subr.mxu1 %v1276_v2 }
  0x14   :  { %1148 = vmatpush3.msra.mxu0 %v1351_v9  ;;  %1110 = vmatprep.mubr.msk.f32.mxu0 %vm21_vm0, %v26_v49 }
  0x15   :  { %1163 = vmatprep.subr.mxu0 %v1276_v2  ;;  %1111 = vmatmul.mubr.msk.f32.gmra.mxu0 %vm21_vm0, %v27_v50 }
  0x16   :  { %1113 = vmatprep.mubr.msk.f32.mxu0 %vm21_vm0, %v28_v51 }
  0x19   :  { %1114 = vmatmul.mubr.msk.f32.gmra.mxu0 %vm21_vm0, %v29_v52 }
  0x1a   :  { %1116 = vmatprep.mubr.msk.f32.mxu0 %vm21_vm0, %v30_v53 }
  0x1d   :  { %1117 = vmatmul.mubr.msk.f32.gmra.mxu0 %vm21_vm0, %v31_v54 }
  0x1e   :  { %1149 = vmatprep.mubr.msk.f32.mxu0 %vm1277_vm1, %v1276_v2 }
  0xca   :  { %v1109_v12 = vpop.f32.mrf.mxu0 }
  0xcb   :  { %v257_v13 = vpop.f32.mrf.mxu1  ;;  %v140_v35 = vadd.f32 %v1109_v12, %v1384_v14 }
  0xcc   :  { %v134_v15 = vpop.f32.mrf.mxu0 }
  0xcd   :  { %v1129_v16 = vpop.f32.mrf.mxu1  ;;  %v135_v17 = vadd.f32 %v1384_v14, %v134_v15 }
  0xcf   :  { %v261_v18 = vadd.f32 %v257_v13, %v135_v17 }
  0xd1   :  { %1212 = vtanh.f32 %v261_v18  ;;  %v1032_v21 = vmul.f32 -1.442695, %v261_v18 }
  0xd3   :  { %1214 = vpow2.f32 %v1032_v21 }
  0xd5   :  { %v1112_v59 = vpop.f32.mrf.mxu0 }
  0xd7   :  { %v144_v60 = vpop.f32.mrf.mxu0 }
  0xd8   :  { %v145_v1 = vadd.f32 %v1384_v14, %v144_v60 }
  0xd9   :  { %v1445_v61 = vpop.f32.mrf.mxu0 }
  0xdb   :  { %v1447_v62 = vpop.f32.mrf.mxu0 }
  0xdd   :  { %v1449_v63 = vpop.f32.mrf.mxu0 }
  0xde   :  { %v1213_v19 = vpop.eup %1212 }
  0xdf   :  { %275 = vrot.lane.b32.xlu0 %v1213_v19, %s1278_s9  ;;  %v1451_v0 = vpop.f32.mrf.mxu0 }
  0xe0   :  { %v1215_v22 = vpop.eup %1214 }
  0xe1   :  { %v265_v23 = vadd.f32 1.0, %v1215_v22 }
  0xe3   :  { %270 = vrot.lane.b32.xlu0 %v186_v20, %s1279_s10  ;;  %1216 = vrcp.f32 %v265_v23 }
  0xf0   :  { %v1217_v24 = vpop.eup %1216 }
 0x151   :  { %v276_v25 = vpop.permute.xlu0 %275 }
 0x152   :  { %v278_v26 = vmul.f32 %v1217_v24, %v276_v25  ;;  %v150_v25 = vadd.f32 %v1112_v59, %v1384_v14 }
 0x154   :  { %280 = vrot.lane.b32.xlu1 %v278_v26, %s1279_s10 }
 0x155   :  { %v271_v27 = vpop.permute.xlu0 %270 }
 0x156   :  { %v273_v28 = vmul.f32 %v1217_v24, %v271_v27 }
 0x1c6   :  { %v281_v29 = vpop.permute.xlu1 %280 }
 0x1c7   :  { %v283_v30 = vadd.f32 %v281_v29, %v273_v28 }
 0x1c9   :  { %1218 = vtanh.f32 %v283_v30 }
 0x1d6   :  { %v1219_v31 = vpop.eup %1218 }
 0x1d7   :  { %286 = vrot.lane.b32.xlu1 %v1219_v31, %s1278_s9 }
 0x249   :  { %v287_v32 = vpop.permute.xlu1 %286 }
 0x24a   :  { %v289_v33 = vmul.f32 %v1217_v24, %v287_v32 }
 0x24c   :  { %293 = vrot.lane.b32.xlu0 %v289_v33, %s1279_s10 }
 0x2be   :  { %v294_v34 = vpop.permute.xlu0 %293 }
 0x2bf   :  { %1139 = vmatmul.mubr.msk.f32.vlgmr.msra.gmra.mxu1 %vm21_vm0, %v294_v34 }
 0x2c0   :  { %1153 = vmatpush3.msra.mxu1 %v1316_v3  ;;  %1160 = vmatprep.mubr.msk.f32.mxu1 %vm1277_vm1, %v1276_v2 }
 0x2c1   :  { %1154 = vmatprep.subr.mxu1 %v1276_v2 }
 0x2c2   :  { %1155 = vmatpush3.msra.mxu1 %v1328_v4 }
 0x2c3   :  { %1156 = vmatprep.subr.mxu1 %v1276_v2 }
 0x2c4   :  { %1157 = vmatpush3.msra.mxu1 %v1341_v7 }
 0x2c5   :  { %1158 = vmatprep.subr.mxu1 %v1276_v2 }
 0x2c6   :  { %1159 = vmatpush3.msra.mxu1 %v1351_v9 }
 0x2c7   :  { %1174 = vmatprep.subr.mxu1 %v1276_v2 }
 0x37f   :  { %v363_v36 = vpop.f32.mrf.mxu1 }
 0x380   :  { %v367_v37 = vadd.f32 %v363_v36, %v140_v35 }
 0x381   :  { %v1140_v38 = vpop.f32.mrf.mxu1 }
 0x382   :  { %1220 = vtanh.f32 %v367_v37  ;;  %v1034_v40 = vmul.f32 -1.442695, %v367_v37 }
 0x384   :  { %1222 = vpow2.f32 %v1034_v40 }
 0x38f   :  { %v1221_v39 = vpop.eup %1220 }
 0x390   :  { %377 = vrot.lane.b32.xlu1 %v1221_v39, %s1278_s9 }
 0x391   :  { %v1223_v41 = vpop.eup %1222 }
 0x392   :  { %v371_v42 = vadd.f32 1.0, %v1223_v41 }
 0x394   :  { %1224 = vrcp.f32 %v371_v42 }
 0x3a1   :  { %v1225_v43 = vpop.eup %1224 }
 0x3a2   :  { %v375_v46 = vmul.f32 %v1225_v43, %v283_v30 }
 0x402   :  { %v378_v44 = vpop.permute.xlu1 %377 }
 0x403   :  { %v380_v45 = vmul.f32 %v1225_v43, %v378_v44 }
 0x405   :  { %382 = vrot.lane.b32.xlu0 %v380_v45, %s1279_s10 }
 0x477   :  { %v383_v47 = vpop.permute.xlu0 %382 }
 0x478   :  { %v385_v48 = vadd.f32 %v383_v47, %v375_v46 }
 0x47a   :  { %1226 = vtanh.f32 %v385_v48 }
 0x487   :  { %v1227_v55 = vpop.eup %1226 }
 0x488   :  { %388 = vrot.lane.b32.xlu1 %v1227_v55, %s1278_s9 }
 0x4fa   :  { %v389_v56 = vpop.permute.xlu1 %388 }
 0x4fb   :  { %v391_v57 = vmul.f32 %v1225_v43, %v389_v56  ;;  %v155_v43 = vadd.f32 %v1384_v14, %v1447_v62  ;;  %v160_v62 = vadd.f32 %v1445_v61, %v1384_v14 }
 0x4fd   :  { %395 = vrot.lane.b32.xlu0 %v391_v57, %s1279_s10 }
 0x56f   :  { %v396_v58 = vpop.permute.xlu0 %395 }
 0x570   :  { %1150 = vmatmul.mubr.msk.f32.vlgmr.msra.gmra.mxu0 %vm21_vm0, %v396_v58 }
 0x571   :  { %1164 = vmatpush3.msra.mxu0 %v1316_v3  ;;  %1171 = vmatprep.mubr.msk.f32.mxu0 %vm1277_vm1, %v1276_v2 }
 0x572   :  { %1165 = vmatprep.subr.mxu0 %v1276_v2 }
 0x573   :  { %1166 = vmatpush3.msra.mxu0 %v1328_v4 }
 0x574   :  { %1167 = vmatprep.subr.mxu0 %v1276_v2 }
 0x575   :  { %1168 = vmatpush3.msra.mxu0 %v1341_v7 }
 0x576   :  { %1169 = vmatprep.subr.mxu0 %v1276_v2 }
 0x577   :  { %1170 = vmatpush3.msra.mxu0 %v1351_v9 }
 0x578   :  { %1185 = vmatprep.subr.mxu0 %v1276_v2 }
 0x630   :  { %v465_v5 = vpop.f32.mrf.mxu0 }
 0x631   :  { %v469_v6 = vadd.f32 %v465_v5, %v145_v1 }
 0x632   :  { %v1151_v8 = vpop.f32.mrf.mxu0 }
 0x633   :  { %1228 = vtanh.f32 %v469_v6  ;;  %v1036_v11 = vmul.f32 -1.442695, %v469_v6 }
 0x635   :  { %1230 = vpow2.f32 %v1036_v11 }
 0x640   :  { %v1229_v10 = vpop.eup %1228 }
 0x641   :  { %479 = vrot.lane.b32.xlu1 %v1229_v10, %s1278_s9 }
 0x642   :  { %v1231_v12 = vpop.eup %1230 }
 0x643   :  { %v473_v13 = vadd.f32 1.0, %v1231_v12 }
 0x645   :  { %1232 = vrcp.f32 %v473_v13 }
 0x652   :  { %v1233_v15 = vpop.eup %1232 }
 0x653   :  { %v477_v18 = vmul.f32 %v1233_v15, %v385_v48 }
 0x6b3   :  { %v480_v16 = vpop.permute.xlu1 %479 }
 0x6b4   :  { %v482_v17 = vmul.f32 %v1233_v15, %v480_v16 }
 0x6b6   :  { %484 = vrot.lane.b32.xlu0 %v482_v17, %s1279_s10 }
 0x728   :  { %v485_v19 = vpop.permute.xlu0 %484 }
 0x729   :  { %v487_v20 = vadd.f32 %v485_v19, %v477_v18  ;;  %v165_v18 = vadd.f32 %v1384_v14, %v1451_v0 }
 0x72b   :  { %1234 = vtanh.f32 %v487_v20 }
 0x738   :  { %v1235_v21 = vpop.eup %1234 }
 0x739   :  { %490 = vrot.lane.b32.xlu1 %v1235_v21, %s1278_s9 }
 0x7ab   :  { %v491_v22 = vpop.permute.xlu1 %490 }
 0x7ac   :  { %v493_v23 = vmul.f32 %v1233_v15, %v491_v22 }
 0x7ae   :  { %497 = vrot.lane.b32.xlu0 %v493_v23, %s1279_s10 }
 0x820   :  { %v498_v24 = vpop.permute.xlu0 %497 }
 0x821   :  { %1161 = vmatmul.mubr.msk.f32.vlgmr.msra.gmra.mxu1 %vm21_vm0, %v498_v24 }
 0x822   :  { %1175 = vmatpush3.msra.mxu1 %v1316_v3  ;;  %1182 = vmatprep.mubr.msk.f32.mxu1 %vm1277_vm1, %v1276_v2 }
 0x823   :  { %1176 = vmatprep.subr.mxu1 %v1276_v2 }
 0x824   :  { %1177 = vmatpush3.msra.mxu1 %v1328_v4 }
 0x825   :  { %1178 = vmatprep.subr.mxu1 %v1276_v2 }
 0x826   :  { %1179 = vmatpush3.msra.mxu1 %v1341_v7 }
 0x827   :  { %1180 = vmatprep.subr.mxu1 %v1276_v2 }
 0x828   :  { %1181 = vmatpush3.msra.mxu1 %v1351_v9 }
 0x829   :  { %1196 = vmatprep.subr.mxu1 %v1276_v2 }
 0x8e1   :  { %v567_v26 = vpop.f32.mrf.mxu1 }
 0x8e2   :  { %v571_v27 = vadd.f32 %v567_v26, %v150_v25 }
 0x8e3   :  { %v1162_v28 = vpop.f32.mrf.mxu1 }
 0x8e4   :  { %1236 = vtanh.f32 %v571_v27  ;;  %v1038_v30 = vmul.f32 -1.442695, %v571_v27 }
 0x8e6   :  { %1238 = vpow2.f32 %v1038_v30 }
 0x8f1   :  { %v1237_v29 = vpop.eup %1236 }
 0x8f2   :  { %581 = vrot.lane.b32.xlu1 %v1237_v29, %s1278_s9 }
 0x8f3   :  { %v1239_v31 = vpop.eup %1238 }
 0x8f4   :  { %v575_v32 = vadd.f32 1.0, %v1239_v31 }
 0x8f6   :  { %1240 = vrcp.f32 %v575_v32 }
 0x903   :  { %v1241_v33 = vpop.eup %1240 }
 0x904   :  { %v579_v36 = vmul.f32 %v1241_v33, %v487_v20 }
 0x964   :  { %v582_v34 = vpop.permute.xlu1 %581 }
 0x965   :  { %v584_v35 = vmul.f32 %v1241_v33, %v582_v34 }
 0x967   :  { %586 = vrot.lane.b32.xlu0 %v584_v35, %s1279_s10  ;;  %v170_v35 = vadd.f32 %v1449_v63, %v1384_v14 }
 0x9d9   :  { %v587_v37 = vpop.permute.xlu0 %586 }
 0x9da   :  { %v589_v38 = vadd.f32 %v587_v37, %v579_v36 }
 0x9dc   :  { %1242 = vtanh.f32 %v589_v38 }
 0x9e9   :  { %v1243_v39 = vpop.eup %1242 }
 0x9ea   :  { %592 = vrot.lane.b32.xlu1 %v1243_v39, %s1278_s9 }
 0xa5c   :  { %v593_v40 = vpop.permute.xlu1 %592 }
 0xa5d   :  { %v595_v41 = vmul.f32 %v1241_v33, %v593_v40 }
 0xa5f   :  { %599 = vrot.lane.b32.xlu0 %v595_v41, %s1279_s10 }
 0xad1   :  { %v600_v42 = vpop.permute.xlu0 %599 }
 0xad2   :  { %1172 = vmatmul.mubr.msk.f32.vlgmr.msra.gmra.mxu0 %vm21_vm0, %v600_v42 }
 0xad3   :  { %1186 = vmatpush3.msra.mxu0 %v1316_v3  ;;  %1193 = vmatprep.mubr.msk.f32.mxu0 %vm1277_vm1, %v1276_v2 }
 0xad4   :  { %1187 = vmatprep.subr.mxu0 %v1276_v2 }
 0xad5   :  { %1188 = vmatpush3.msra.mxu0 %v1328_v4 }
 0xad6   :  { %1189 = vmatprep.subr.mxu0 %v1276_v2 }
 0xad7   :  { %1190 = vmatpush3.msra.mxu0 %v1341_v7 }
 0xad8   :  { %1191 = vmatprep.subr.mxu0 %v1276_v2 }
 0xad9   :  { %1192 = vmatpush3.msra.mxu0 %v1351_v9 }
 0xb92   :  { %v669_v44 = vpop.f32.mrf.mxu0 }
 0xb93   :  { %v673_v45 = vadd.f32 %v669_v44, %v155_v43 }
 0xb94   :  { %v1173_v46 = vpop.f32.mrf.mxu0 }
 0xb95   :  { %1244 = vtanh.f32 %v673_v45  ;;  %v1040_v48 = vmul.f32 -1.442695, %v673_v45 }
 0xb97   :  { %1246 = vpow2.f32 %v1040_v48 }
 0xba2   :  { %v1245_v47 = vpop.eup %1244 }
 0xba3   :  { %683 = vrot.lane.b32.xlu1 %v1245_v47, %s1278_s9 }
 0xba4   :  { %v1247_v49 = vpop.eup %1246 }
 0xba5   :  { %v677_v50 = vadd.f32 1.0, %v1247_v49 }
 0xba7   :  { %1248 = vrcp.f32 %v677_v50 }
 0xbb4   :  { %v1249_v51 = vpop.eup %1248 }
 0xbb5   :  { %v681_v54 = vmul.f32 %v1249_v51, %v589_v38 }
 0xc15   :  { %v684_v52 = vpop.permute.xlu1 %683 }
 0xc16   :  { %v686_v53 = vmul.f32 %v1249_v51, %v684_v52 }
 0xc18   :  { %688 = vrot.lane.b32.xlu0 %v686_v53, %s1279_s10 }
 0xc8a   :  { %v689_v55 = vpop.permute.xlu0 %688 }
 0xc8b   :  { %v691_v56 = vadd.f32 %v689_v55, %v681_v54 }
 0xc8d   :  { %1250 = vtanh.f32 %v691_v56 }
 0xc9a   :  { %v1251_v57 = vpop.eup %1250 }
 0xc9b   :  { %694 = vrot.lane.b32.xlu1 %v1251_v57, %s1278_s9 }
 0xd0d   :  { %v695_v58 = vpop.permute.xlu1 %694 }
 0xd0e   :  { %v697_v59 = vmul.f32 %v1249_v51, %v695_v58 }
 0xd10   :  { %701 = vrot.lane.b32.xlu0 %v697_v59, %s1279_s10 }
 0xd82   :  { %v702_v60 = vpop.permute.xlu0 %701 }
 0xd83   :  { %1183 = vmatmul.mubr.msk.f32.vlgmr.msra.gmra.mxu1 %vm21_vm0, %v702_v60 }
 0xd84   :  { %1197 = vmatpush3.msra.mxu1 %v1316_v3  ;;  %1204 = vmatprep.mubr.msk.f32.mxu1 %vm1277_vm1, %v1276_v2 }
 0xd85   :  { %1198 = vmatprep.subr.mxu1 %v1276_v2 }
 0xd86   :  { %1199 = vmatpush3.msra.mxu1 %v1328_v4 }
 0xd87   :  { %1200 = vmatprep.subr.mxu1 %v1276_v2 }
 0xd88   :  { %1201 = vmatpush3.msra.mxu1 %v1341_v7 }
 0xd89   :  { %1202 = vmatprep.subr.mxu1 %v1276_v2 }
 0xd8a   :  { %1203 = vmatpush3.msra.mxu1 %v1351_v9 }
 0xe43   :  { %v771_v1 = vpop.f32.mrf.mxu1 }
 0xe44   :  { %v775_v3 = vadd.f32 %v771_v1, %v160_v62 }
 0xe45   :  { %v1184_v5 = vpop.f32.mrf.mxu1 }
 0xe46   :  { %1252 = vtanh.f32 %v775_v3  ;;  %v1042_v8 = vmul.f32 -1.442695, %v775_v3 }
 0xe48   :  { %1254 = vpow2.f32 %v1042_v8 }
 0xe53   :  { %v1253_v6 = vpop.eup %1252 }
 0xe54   :  { %785 = vrot.lane.b32.xlu1 %v1253_v6, %s1278_s9 }
 0xe55   :  { %v1255_v4 = vpop.eup %1254 }
 0xe56   :  { %v779_v10 = vadd.f32 1.0, %v1255_v4 }
 0xe58   :  { %1256 = vrcp.f32 %v779_v10 }
 0xe65   :  { %v1257_v7 = vpop.eup %1256 }
 0xe66   :  { %v783_v9 = vmul.f32 %v1257_v7, %v691_v56 }
 0xec6   :  { %v786_v11 = vpop.permute.xlu1 %785 }
 0xec7   :  { %v788_v2 = vmul.f32 %v1257_v7, %v786_v11 }
 0xec9   :  { %790 = vrot.lane.b32.xlu0 %v788_v2, %s1279_s10 }
 0xf3b   :  { %v791_v12 = vpop.permute.xlu0 %790 }
 0xf3c   :  { %v793_v61 = vadd.f32 %v791_v12, %v783_v9 }
 0xf3e   :  { %1258 = vtanh.f32 %v793_v61 }
 0xf4b   :  { %v1259_v13 = vpop.eup %1258 }
 0xf4c   :  { %796 = vrot.lane.b32.xlu1 %v1259_v13, %s1278_s9 }
 0xfbe   :  { %v797_v15 = vpop.permute.xlu1 %796 }
 0xfbf   :  { %v799_v16 = vmul.f32 %v1257_v7, %v797_v15 }
 0xfc1   :  { %803 = vrot.lane.b32.xlu0 %v799_v16, %s1279_s10 }
0x1033   :  { %v804_v17 = vpop.permute.xlu0 %803 }
0x1034   :  { %1194 = vmatmul.mubr.msk.f32.vlgmr.msra.gmra.mxu0 %vm21_vm0, %v804_v17 }
0x10f4   :  { %v873_v19 = vpop.f32.mrf.mxu0 }
0x10f5   :  { %v877_v20 = vadd.f32 %v873_v19, %v165_v18 }
0x10f6   :  { %v1195_v21 = vpop.f32.mrf.mxu0 }
0x10f7   :  { %1260 = vtanh.f32 %v877_v20  ;;  %v1044_v23 = vmul.f32 -1.442695, %v877_v20 }
0x10f9   :  { %1262 = vpow2.f32 %v1044_v23 }
0x1104   :  { %v1261_v22 = vpop.eup %1260 }
0x1105   :  { %887 = vrot.lane.b32.xlu1 %v1261_v22, %s1278_s9 }
0x1106   :  { %v1263_v24 = vpop.eup %1262 }
0x1107   :  { %v881_v25 = vadd.f32 1.0, %v1263_v24 }
0x1109   :  { %1264 = vrcp.f32 %v881_v25 }
0x1116   :  { %v1265_v26 = vpop.eup %1264 }
0x1117   :  { %v885_v29 = vmul.f32 %v1265_v26, %v793_v61 }
0x1177   :  { %v888_v27 = vpop.permute.xlu1 %887 }
0x1178   :  { %v890_v28 = vmul.f32 %v1265_v26, %v888_v27 }
0x117a   :  { %892 = vrot.lane.b32.xlu0 %v890_v28, %s1279_s10 }
0x11ec   :  { %v893_v30 = vpop.permute.xlu0 %892 }
0x11ed   :  { %v895_v0 = vadd.f32 %v893_v30, %v885_v29 }
0x11ef   :  { %1266 = vtanh.f32 %v895_v0 }
0x11fc   :  { %v1267_v31 = vpop.eup %1266 }
0x11fd   :  { %898 = vrot.lane.b32.xlu1 %v1267_v31, %s1278_s9 }
0x126f   :  { %v899_v32 = vpop.permute.xlu1 %898 }
0x1270   :  { %v901_v33 = vmul.f32 %v1265_v26, %v899_v32 }
0x1272   :  { %905 = vrot.lane.b32.xlu0 %v901_v33, %s1279_s10 }
0x12e4   :  { %v906_v34 = vpop.permute.xlu0 %905 }
0x12e5   :  { %1205 = vmatmul.mubr.msk.f32.vlgmr.msra.gmra.mxu1 %vm21_vm0, %v906_v34 }
0x13a5   :  { %v975_v36 = vpop.f32.mrf.mxu1 }
0x13a6   :  { %v979_v37 = vadd.f32 %v975_v36, %v170_v35 }
0x13a7   :  { %v1206_v38 = vpop.f32.mrf.mxu1 }
0x13a8   :  { %1268 = vtanh.f32 %v979_v37  ;;  %v1046_v40 = vmul.f32 -1.442695, %v979_v37 }
0x13aa   :  { %1270 = vpow2.f32 %v1046_v40 }
0x13b5   :  { %v1269_v39 = vpop.eup %1268 }
0x13b6   :  { %989 = vrot.lane.b32.xlu1 %v1269_v39, %s1278_s9 }
0x13b7   :  { %v1271_v41 = vpop.eup %1270 }
0x13b8   :  { %v983_v42 = vadd.f32 1.0, %v1271_v41 }
0x13ba   :  { %1272 = vrcp.f32 %v983_v42 }
0x13c7   :  { %v1273_v43 = vpop.eup %1272 }
0x13c8   :  { %v987_v46 = vmul.f32 %v1273_v43, %v895_v0 }
0x1428   :  { %v990_v44 = vpop.permute.xlu1 %989 }
0x1429   :  { %v992_v45 = vmul.f32 %v1273_v43, %v990_v44 }
0x142b   :  { %994 = vrot.lane.b32.xlu0 %v992_v45, %s1279_s10 }
0x149d   :  { %v995_v47 = vpop.permute.xlu0 %994 }
0x149e   :  { %v997_v14 = vadd.f32 %v995_v47, %v987_v46 }
0x14a0   :  { %1274 = vtanh.f32 %v997_v14 }
0x14ad   :  { %v1275_v63 = vpop.eup %1274 }
0x14ae   :  { %1000 = vrot.lane.b32.xlu1 %v1275_v63, %s1278_s9 }
0x14b2   :  { %1010 = vrot.lane.b32.xlu1 %v997_v14, %s1280_s0 }
0x1520   :  { %v1001_v48 = vpop.permute.xlu1 %1000 }
0x1521   :  { %v1003_v49 = vmul.f32 %v1273_v43, %v1001_v48 }
0x1523   :  { %1005 = vrot.lane.b32.xlu0 %v1003_v49, %s1279_s10 }
0x1524   :  { %v1011_v50 = vpop.permute.xlu1 %1010 }
0x1525   :  { %1013 = vst.msk [vmem:[#allocation3] sm:$0xff] %vm21_vm0, %v1011_v50 }
0x1595   :  { %v1006_v51 = vpop.permute.xlu0 %1005 }
0x1596   :  { %1008 = vst.msk [vmem:[#allocation2] sm:$0xff] %vm21_vm0, %v1006_v51  ;;  %1017 = vst.msk [vmem:[%s1530_s4] sm:$0xff] %vm21_vm0, %v1006_v51 }

// kernel: lstm_model_forward.3
= control target key start
LH: loop header
LB: loop body
LE: loop exit
PB: predicated region body
PF: predicated region fallthrough
CT: control target
= control target key end

     0   :  { %vm21_vm0 = vcmask 261120   ;;  %v1294_v0 = vmov 0.0   ;;  %vm1295_vm1 = vmmov 0   ;;  %vm41_vm2 = vcmask 130048   ;;  %s1296_s5 = smov 64   ;;  %s1297_s6 = smov 32   ;;  %s1566_s1 = inlined_call_operand.vmem [shape: f32[16,128], index: 1, kind: input, shape index: {}]   ;;  %s1567_s2 = inlined_call_operand.vmem [shape: f32[32,128], index: 2, kind: input, shape index: {}]   ;;  %s1568_s0 = inlined_call_operand.vmem [shape: f32[8,8,16], index: 0, kind: input, shape index: {}]   ;;  %s1569_s3 = inlined_call_operand.vmem [shape: f32[1,128], index: 3, kind: input, shape index: {}]   ;;  %s1570_s4 = inlined_call_operand.vmem [shape: f32[8,8,32], index: 4, kind: output, shape index: {}]  }
   0x1   :  { %1137 = vmatprep.subr.mxu1 %v1294_v0  ;;  %v33_v1 = vld [vmem:[%s1566_s1 + $0x8] sm:$0xff]  ;;  %v1331_v2 = vld [vmem:[%s1567_s2 + $0x18] sm:$0xff]  ;;  %v32_v3 = vld [vmem:[%s1566_s1] sm:$0xff]  ;;  %1145 = vmatprep.mubr.msk.f32.mxu1 %vm1295_vm1, %v1294_v0  ;;  %22 = vst.msk [vmem:[#allocation2] sm:$0xff] %vm21_vm0, %v1294_v0 }
   0x2   :  { %23 = vst.msk [vmem:[#allocation3] sm:$0xff] %vm21_vm0, %v1294_v0  ;;  %1121 = vmatprep.subr.mxu0 %v33_v1  ;;  %1138 = vmatpush3.msra.mxu1 %v1331_v2  ;;  %v1346_v4 = vld [vmem:[%s1567_s2 + $0x10] sm:$0xff]  ;;  %v24_v5 = vld [vmem:[%s1568_s0] sm:$0xff]  ;;  %v25_v6 = vld [vmem:[%s1568_s0 + $0x8] sm:$0xff] }
   0x3   :  { %1122 = vmatpush3.msra.mxu0 %v33_v1  ;;  %1139 = vmatprep.subr.mxu1 %v1294_v0  ;;  %v1359_v7 = vld [vmem:[%s1567_s2 + $0x8] sm:$0xff]  ;;  %v1367_v8 = vld [vmem:[%s1567_s2] sm:$0xff]  ;;  %v26_v47 = vld [vmem:[%s1568_s0 + $0x10] sm:$0xff]  ;;  %s1298_s2 = smov 96  }
   0x4   :  { %1123 = vmatprep.subr.mxu0 %v32_v3  ;;  %1140 = vmatpush3.msra.mxu1 %v1346_v4  ;;  %v1396_v11 = vld [vmem:[%s1569_s3] ss:$0 sm:$0xff]  ;;  %v27_v48 = vld [vmem:[%s1568_s0 + $0x18] sm:$0xff]  ;;  %v29_v50 = vld [vmem:[%s1568_s0 + $0x28] sm:$0xff] }
   0x5   :  { %1124 = vmatpush3.msra.mxu0 %v32_v3  ;;  %1125 = vmatprep.mubr.msk.f32.mxu0 %vm41_vm2, %v24_v5  ;;  %v28_v49 = vld [vmem:[%s1568_s0 + $0x20] sm:$0xff]  ;;  %v30_v51 = vld [vmem:[%s1568_s0 + $0x30] sm:$0xff]  ;;  %v31_v52 = vld [vmem:[%s1568_s0 + $0x38] sm:$0xff] }
   0x6   :  { %1141 = vmatprep.subr.mxu1 %v1294_v0  ;;  %1126 = vmatmul.mubr.msk.f32.vlgmr.msra.gmra.mxu0 %vm41_vm2, %v25_v6 }
   0x7   :  { %1142 = vmatpush3.msra.mxu1 %v1359_v7  ;;  %1159 = vmatprep.subr.mxu0 %v1294_v0 }
   0x8   :  { %1143 = vmatprep.subr.mxu1 %v1294_v0  ;;  %v183_v9 = vld [vmem:[#allocation2] sm:$0xff]  ;;  %1160 = vmatpush3.msra.mxu0 %v1331_v2 }
   0x9   :  { %1144 = vmatpush3.msra.mxu1 %v1367_v8  ;;  %1161 = vmatprep.subr.mxu0 %v1294_v0  ;;  %v184_v18 = vld [vmem:[#allocation3] sm:$0xff] }
   0xa   :  { %1146 = vmatmul.mubr.msk.f32.vlgmr.msra.gmra.mxu1 %vm21_vm0, %v183_v9  ;;  %1148 = vmatprep.subr.mxu1 %v1294_v0 }
   0xb   :  { %1149 = vmatpush3.msra.mxu1 %v1331_v2  ;;  %1156 = vmatprep.mubr.msk.f32.mxu1 %vm1295_vm1, %v1294_v0 }
   0xc   :  { %1150 = vmatprep.subr.mxu1 %v1294_v0  ;;  %1162 = vmatpush3.msra.mxu0 %v1346_v4 }
   0xd   :  { %1151 = vmatpush3.msra.mxu1 %v1346_v4  ;;  %1163 = vmatprep.subr.mxu0 %v1294_v0 }
   0xe   :  { %1152 = vmatprep.subr.mxu1 %v1294_v0  ;;  %1164 = vmatpush3.msra.mxu0 %v1359_v7 }
   0xf   :  { %1153 = vmatpush3.msra.mxu1 %v1359_v7  ;;  %1165 = vmatprep.subr.mxu0 %v1294_v0 }
  0x10   :  { %1154 = vmatprep.subr.mxu1 %v1294_v0  ;;  %1166 = vmatpush3.msra.mxu0 %v1367_v8 }
  0x11   :  { %1155 = vmatpush3.msra.mxu1 %v1367_v8  ;;  %1181 = vmatprep.subr.mxu0 %v1294_v0 }
  0x12   :  { %1170 = vmatprep.subr.mxu1 %v1294_v0  ;;  %1128 = vmatprep.mubr.msk.f32.mxu0 %vm41_vm2, %v26_v47 }
  0x13   :  { %1129 = vmatmul.mubr.msk.f32.gmra.mxu0 %vm41_vm2, %v27_v48 }
  0x14   :  { %1131 = vmatprep.mubr.msk.f32.mxu0 %vm41_vm2, %v28_v49 }
  0x17   :  { %1132 = vmatmul.mubr.msk.f32.gmra.mxu0 %vm41_vm2, %v29_v50 }
  0x18   :  { %1134 = vmatprep.mubr.msk.f32.mxu0 %vm41_vm2, %v30_v51 }
  0x1b   :  { %1135 = vmatmul.mubr.msk.f32.gmra.mxu0 %vm41_vm2, %v31_v52 }
  0x1c   :  { %1167 = vmatprep.mubr.msk.f32.mxu0 %vm1295_vm1, %v1294_v0 }
  0xc6   :  { %v1127_v10 = vpop.f32.mrf.mxu0 }
  0xc7   :  { %v138_v33 = vadd.f32 %v1127_v10, %v1396_v11 }
  0xc8   :  { %v132_v12 = vpop.f32.mrf.mxu0 }
  0xc9   :  { %v133_v13 = vadd.f32 %v1396_v11, %v132_v12 }
  0xca   :  { %v256_v14 = vpop.f32.mrf.mxu1 }
  0xcb   :  { %v260_v15 = vadd.f32 %v256_v14, %v133_v13 }
  0xcc   :  { %v1147_v16 = vpop.f32.mrf.mxu1 }
  0xcd   :  { %1230 = vtanh.f32 %v260_v15  ;;  %v1049_v19 = vmul.f32 -1.442695, %v260_v15 }
  0xcf   :  { %1232 = vpow2.f32 %v1049_v19 }
  0xd3   :  { %v1130_v57 = vpop.f32.mrf.mxu0 }
  0xd5   :  { %v142_v58 = vpop.f32.mrf.mxu0 }
  0xd6   :  { %v143_v63 = vadd.f32 %v1396_v11, %v142_v58 }
  0xd7   :  { %v1465_v59 = vpop.f32.mrf.mxu0 }
  0xd9   :  { %v1467_v60 = vpop.f32.mrf.mxu0 }
  0xda   :  { %v1231_v17 = vpop.eup %1230 }
  0xdb   :  { %274 = vrot.lane.b32.xlu0 %v1231_v17, %s1296_s5  ;;  %v1469_v61 = vpop.f32.mrf.mxu0 }
  0xdc   :  { %v1233_v20 = vpop.eup %1232 }
  0xdd   :  { %v264_v21 = vadd.f32 1.0, %v1233_v20  ;;  %v1471_v62 = vpop.f32.mrf.mxu0 }
  0xdf   :  { %269 = vrot.lane.b32.xlu0 %v184_v18, %s1297_s6  ;;  %1234 = vrcp.f32 %v264_v21 }
  0xec   :  { %v1235_v22 = vpop.eup %1234 }
 0x14d   :  { %v275_v23 = vpop.permute.xlu0 %274 }
 0x14e   :  { %v277_v24 = vmul.f32 %v1235_v22, %v275_v23  ;;  %v148_v23 = vadd.f32 %v1130_v57, %v1396_v11 }
 0x150   :  { %279 = vrot.lane.b32.xlu1 %v277_v24, %s1297_s6 }
 0x151   :  { %v270_v25 = vpop.permute.xlu0 %269 }
 0x152   :  { %v272_v26 = vmul.f32 %v1235_v22, %v270_v25 }
 0x1c2   :  { %v280_v27 = vpop.permute.xlu1 %279 }
 0x1c3   :  { %v282_v28 = vadd.f32 %v280_v27, %v272_v26 }
 0x1c5   :  { %1236 = vtanh.f32 %v282_v28 }
 0x1d2   :  { %v1237_v29 = vpop.eup %1236 }
 0x1d3   :  { %285 = vrot.lane.b32.xlu1 %v1237_v29, %s1296_s5 }
 0x245   :  { %v286_v30 = vpop.permute.xlu1 %285 }
 0x246   :  { %v288_v31 = vmul.f32 %v1235_v22, %v286_v30 }
 0x248   :  { %290 = vrot.lane.b32.xlu0 %v288_v31, %s1297_s6 }
 0x2ba   :  { %v291_v32 = vpop.permute.xlu0 %290 }
 0x2bb   :  { %293 = vst.msk [vmem:[%s1570_s4] sm:$0xff] %vm21_vm0, %v291_v32  ;;  %1157 = vmatmul.mubr.msk.f32.vlgmr.msra.gmra.mxu1 %vm21_vm0, %v291_v32 }
 0x2bc   :  { %1171 = vmatpush3.msra.mxu1 %v1331_v2  ;;  %1178 = vmatprep.mubr.msk.f32.mxu1 %vm1295_vm1, %v1294_v0 }
 0x2bd   :  { %1172 = vmatprep.subr.mxu1 %v1294_v0 }
 0x2be   :  { %1173 = vmatpush3.msra.mxu1 %v1346_v4 }
 0x2bf   :  { %1174 = vmatprep.subr.mxu1 %v1294_v0 }
 0x2c0   :  { %1175 = vmatpush3.msra.mxu1 %v1359_v7 }
 0x2c1   :  { %1176 = vmatprep.subr.mxu1 %v1294_v0 }
 0x2c2   :  { %1177 = vmatpush3.msra.mxu1 %v1367_v8 }
 0x2c3   :  { %1192 = vmatprep.subr.mxu1 %v1294_v0 }
 0x37b   :  { %v364_v34 = vpop.f32.mrf.mxu1 }
 0x37c   :  { %v368_v35 = vadd.f32 %v364_v34, %v138_v33 }
 0x37d   :  { %v1158_v36 = vpop.f32.mrf.mxu1 }
 0x37e   :  { %1238 = vtanh.f32 %v368_v35  ;;  %v1051_v38 = vmul.f32 -1.442695, %v368_v35 }
 0x380   :  { %1240 = vpow2.f32 %v1051_v38 }
 0x38b   :  { %v1239_v37 = vpop.eup %1238 }
 0x38c   :  { %378 = vrot.lane.b32.xlu1 %v1239_v37, %s1296_s5 }
 0x38d   :  { %v1241_v39 = vpop.eup %1240 }
 0x38e   :  { %v372_v40 = vadd.f32 1.0, %v1241_v39 }
 0x390   :  { %1242 = vrcp.f32 %v372_v40 }
 0x39d   :  { %v1243_v41 = vpop.eup %1242 }
 0x39e   :  { %v376_v44 = vmul.f32 %v1243_v41, %v282_v28 }
 0x3fe   :  { %v379_v42 = vpop.permute.xlu1 %378 }
 0x3ff   :  { %v381_v43 = vmul.f32 %v1243_v41, %v379_v42 }
 0x401   :  { %383 = vrot.lane.b32.xlu0 %v381_v43, %s1297_s6 }
 0x473   :  { %v384_v45 = vpop.permute.xlu0 %383 }
 0x474   :  { %v386_v46 = vadd.f32 %v384_v45, %v376_v44 }
 0x476   :  { %1244 = vtanh.f32 %v386_v46 }
 0x483   :  { %v1245_v53 = vpop.eup %1244 }
 0x484   :  { %389 = vrot.lane.b32.xlu1 %v1245_v53, %s1296_s5 }
 0x4f6   :  { %v390_v54 = vpop.permute.xlu1 %389 }
 0x4f7   :  { %v392_v55 = vmul.f32 %v1243_v41, %v390_v54  ;;  %v153_v41 = vadd.f32 %v1396_v11, %v1467_v60  ;;  %v158_v60 = vadd.f32 %v1465_v59, %v1396_v11 }
 0x4f9   :  { %394 = vrot.lane.b32.xlu0 %v392_v55, %s1297_s6 }
 0x56b   :  { %v395_v56 = vpop.permute.xlu0 %394 }
 0x56c   :  { %1052 = vst.msk [vmem:[%s1570_s4 + $0x8] sm:$0xff] %vm21_vm0, %v395_v56  ;;  %1168 = vmatmul.mubr.msk.f32.vlgmr.msra.gmra.mxu0 %vm21_vm0, %v395_v56 }
 0x56d   :  { %1182 = vmatpush3.msra.mxu0 %v1331_v2  ;;  %1189 = vmatprep.mubr.msk.f32.mxu0 %vm1295_vm1, %v1294_v0 }
 0x56e   :  { %1183 = vmatprep.subr.mxu0 %v1294_v0 }
 0x56f   :  { %1184 = vmatpush3.msra.mxu0 %v1346_v4 }
 0x570   :  { %1185 = vmatprep.subr.mxu0 %v1294_v0 }
 0x571   :  { %1186 = vmatpush3.msra.mxu0 %v1359_v7 }
 0x572   :  { %1187 = vmatprep.subr.mxu0 %v1294_v0 }
 0x573   :  { %1188 = vmatpush3.msra.mxu0 %v1367_v8 }
 0x574   :  { %1203 = vmatprep.subr.mxu0 %v1294_v0 }
 0x62c   :  { %v469_v1 = vpop.f32.mrf.mxu0 }
 0x62d   :  { %v473_v3 = vadd.f32 %v469_v1, %v143_v63 }
 0x62e   :  { %v1169_v5 = vpop.f32.mrf.mxu0 }
 0x62f   :  { %1246 = vtanh.f32 %v473_v3  ;;  %v1054_v9 = vmul.f32 -1.442695, %v473_v3 }
 0x631   :  { %1248 = vpow2.f32 %v1054_v9 }
 0x63c   :  { %v1247_v6 = vpop.eup %1246 }
 0x63d   :  { %483 = vrot.lane.b32.xlu1 %v1247_v6, %s1296_s5 }
 0x63e   :  { %v1249_v10 = vpop.eup %1248 }
 0x63f   :  { %v477_v12 = vadd.f32 1.0, %v1249_v10 }
 0x641   :  { %1250 = vrcp.f32 %v477_v12 }
 0x64e   :  { %v1251_v13 = vpop.eup %1250 }
 0x64f   :  { %v481_v16 = vmul.f32 %v1251_v13, %v386_v46 }
 0x6af   :  { %v484_v14 = vpop.permute.xlu1 %483 }
 0x6b0   :  { %v486_v15 = vmul.f32 %v1251_v13, %v484_v14 }
 0x6b2   :  { %488 = vrot.lane.b32.xlu0 %v486_v15, %s1297_s6 }
 0x724   :  { %v489_v17 = vpop.permute.xlu0 %488 }
 0x725   :  { %v491_v18 = vadd.f32 %v489_v17, %v481_v16  ;;  %v163_v16 = vadd.f32 %v1396_v11, %v1471_v62 }
 0x727   :  { %1252 = vtanh.f32 %v491_v18 }
 0x734   :  { %v1253_v19 = vpop.eup %1252 }
 0x735   :  { %494 = vrot.lane.b32.xlu1 %v1253_v19, %s1296_s5 }
 0x7a7   :  { %v495_v20 = vpop.permute.xlu1 %494 }
 0x7a8   :  { %v497_v21 = vmul.f32 %v1251_v13, %v495_v20 }
 0x7aa   :  { %499 = vrot.lane.b32.xlu0 %v497_v21, %s1297_s6 }
 0x81c   :  { %v500_v22 = vpop.permute.xlu0 %499 }
 0x81d   :  { %1055 = vst.msk [vmem:[%s1570_s4 + $0x10] sm:$0xff] %vm21_vm0, %v500_v22  ;;  %1179 = vmatmul.mubr.msk.f32.vlgmr.msra.gmra.mxu1 %vm21_vm0, %v500_v22 }
 0x81e   :  { %1193 = vmatpush3.msra.mxu1 %v1331_v2  ;;  %1200 = vmatprep.mubr.msk.f32.mxu1 %vm1295_vm1, %v1294_v0 }
 0x81f   :  { %1194 = vmatprep.subr.mxu1 %v1294_v0 }
 0x820   :  { %1195 = vmatpush3.msra.mxu1 %v1346_v4 }
 0x821   :  { %1196 = vmatprep.subr.mxu1 %v1294_v0 }
 0x822   :  { %1197 = vmatpush3.msra.mxu1 %v1359_v7 }
 0x823   :  { %1198 = vmatprep.subr.mxu1 %v1294_v0 }
 0x824   :  { %1199 = vmatpush3.msra.mxu1 %v1367_v8 }
 0x825   :  { %1214 = vmatprep.subr.mxu1 %v1294_v0 }
 0x8dd   :  { %v574_v24 = vpop.f32.mrf.mxu1 }
 0x8de   :  { %v578_v25 = vadd.f32 %v574_v24, %v148_v23 }
 0x8df   :  { %v1180_v26 = vpop.f32.mrf.mxu1 }
 0x8e0   :  { %1254 = vtanh.f32 %v578_v25  ;;  %v1057_v28 = vmul.f32 -1.442695, %v578_v25 }
 0x8e2   :  { %1256 = vpow2.f32 %v1057_v28 }
 0x8ed   :  { %v1255_v27 = vpop.eup %1254 }
 0x8ee   :  { %588 = vrot.lane.b32.xlu1 %v1255_v27, %s1296_s5 }
 0x8ef   :  { %v1257_v29 = vpop.eup %1256 }
 0x8f0   :  { %v582_v30 = vadd.f32 1.0, %v1257_v29 }
 0x8f2   :  { %1258 = vrcp.f32 %v582_v30 }
 0x8ff   :  { %v1259_v31 = vpop.eup %1258 }
 0x900   :  { %v586_v34 = vmul.f32 %v1259_v31, %v491_v18 }
 0x960   :  { %v589_v32 = vpop.permute.xlu1 %588 }
 0x961   :  { %v591_v33 = vmul.f32 %v1259_v31, %v589_v32 }
 0x963   :  { %593 = vrot.lane.b32.xlu0 %v591_v33, %s1297_s6  ;;  %v168_v33 = vadd.f32 %v1469_v61, %v1396_v11 }
 0x9d5   :  { %v594_v35 = vpop.permute.xlu0 %593 }
 0x9d6   :  { %v596_v36 = vadd.f32 %v594_v35, %v586_v34 }
 0x9d8   :  { %1260 = vtanh.f32 %v596_v36 }
 0x9e5   :  { %v1261_v37 = vpop.eup %1260 }
 0x9e6   :  { %599 = vrot.lane.b32.xlu1 %v1261_v37, %s1296_s5 }
 0xa58   :  { %v600_v38 = vpop.permute.xlu1 %599 }
 0xa59   :  { %v602_v39 = vmul.f32 %v1259_v31, %v600_v38 }
 0xa5b   :  { %604 = vrot.lane.b32.xlu0 %v602_v39, %s1297_s6 }
 0xacd   :  { %v605_v40 = vpop.permute.xlu0 %604 }
 0xace   :  { %1058 = vst.msk [vmem:[%s1570_s4 + $0x18] sm:$0xff] %vm21_vm0, %v605_v40  ;;  %1190 = vmatmul.mubr.msk.f32.vlgmr.msra.gmra.mxu0 %vm21_vm0, %v605_v40 }
 0xacf   :  { %1204 = vmatpush3.msra.mxu0 %v1331_v2  ;;  %1211 = vmatprep.mubr.msk.f32.mxu0 %vm1295_vm1, %v1294_v0 }
 0xad0   :  { %1205 = vmatprep.subr.mxu0 %v1294_v0 }
 0xad1   :  { %1206 = vmatpush3.msra.mxu0 %v1346_v4 }
 0xad2   :  { %1207 = vmatprep.subr.mxu0 %v1294_v0 }
 0xad3   :  { %1208 = vmatpush3.msra.mxu0 %v1359_v7 }
 0xad4   :  { %1209 = vmatprep.subr.mxu0 %v1294_v0 }
 0xad5   :  { %1210 = vmatpush3.msra.mxu0 %v1367_v8 }
 0xb8e   :  { %v679_v42 = vpop.f32.mrf.mxu0 }
 0xb8f   :  { %v683_v43 = vadd.f32 %v679_v42, %v153_v41 }
 0xb90   :  { %v1191_v44 = vpop.f32.mrf.mxu0 }
 0xb91   :  { %1262 = vtanh.f32 %v683_v43  ;;  %v1060_v46 = vmul.f32 -1.442695, %v683_v43 }
 0xb93   :  { %1264 = vpow2.f32 %v1060_v46 }
 0xb9e   :  { %v1263_v45 = vpop.eup %1262 }
 0xb9f   :  { %693 = vrot.lane.b32.xlu1 %v1263_v45, %s1296_s5 }
 0xba0   :  { %v1265_v47 = vpop.eup %1264 }
 0xba1   :  { %v687_v48 = vadd.f32 1.0, %v1265_v47 }
 0xba3   :  { %1266 = vrcp.f32 %v687_v48 }
 0xbb0   :  { %v1267_v49 = vpop.eup %1266 }
 0xbb1   :  { %v691_v52 = vmul.f32 %v1267_v49, %v596_v36 }
 0xc11   :  { %v694_v50 = vpop.permute.xlu1 %693 }
 0xc12   :  { %v696_v51 = vmul.f32 %v1267_v49, %v694_v50 }
 0xc14   :  { %698 = vrot.lane.b32.xlu0 %v696_v51, %s1297_s6 }
 0xc86   :  { %v699_v53 = vpop.permute.xlu0 %698 }
 0xc87   :  { %v701_v54 = vadd.f32 %v699_v53, %v691_v52 }
 0xc89   :  { %1268 = vtanh.f32 %v701_v54 }
 0xc96   :  { %v1269_v55 = vpop.eup %1268 }
 0xc97   :  { %704 = vrot.lane.b32.xlu1 %v1269_v55, %s1296_s5 }
 0xd09   :  { %v705_v56 = vpop.permute.xlu1 %704 }
 0xd0a   :  { %v707_v57 = vmul.f32 %v1267_v49, %v705_v56 }
 0xd0c   :  { %709 = vrot.lane.b32.xlu0 %v707_v57, %s1297_s6 }
 0xd7e   :  { %v710_v58 = vpop.permute.xlu0 %709 }
 0xd7f   :  { %1061 = vst.msk [vmem:[%s1570_s4 + $0x20] sm:$0xff] %vm21_vm0, %v710_v58  ;;  %1201 = vmatmul.mubr.msk.f32.vlgmr.msra.gmra.mxu1 %vm21_vm0, %v710_v58 }
 0xd80   :  { %1215 = vmatpush3.msra.mxu1 %v1331_v2  ;;  %1222 = vmatprep.mubr.msk.f32.mxu1 %vm1295_vm1, %v1294_v0 }
 0xd81   :  { %1216 = vmatprep.subr.mxu1 %v1294_v0 }
 0xd82   :  { %1217 = vmatpush3.msra.mxu1 %v1346_v4 }
 0xd83   :  { %1218 = vmatprep.subr.mxu1 %v1294_v0 }
 0xd84   :  { %1219 = vmatpush3.msra.mxu1 %v1359_v7 }
 0xd85   :  { %1220 = vmatprep.subr.mxu1 %v1294_v0 }
 0xd86   :  { %1221 = vmatpush3.msra.mxu1 %v1367_v8 }
 0xe3f   :  { %v784_v63 = vpop.f32.mrf.mxu1 }
 0xe40   :  { %v788_v2 = vadd.f32 %v784_v63, %v158_v60 }
 0xe41   :  { %v1202_v1 = vpop.f32.mrf.mxu1 }
 0xe42   :  { %1270 = vtanh.f32 %v788_v2  ;;  %v1063_v5 = vmul.f32 -1.442695, %v788_v2 }
 0xe44   :  { %1272 = vpow2.f32 %v1063_v5 }
 0xe4f   :  { %v1271_v3 = vpop.eup %1270 }
 0xe50   :  { %798 = vrot.lane.b32.xlu1 %v1271_v3, %s1296_s5 }
 0xe51   :  { %v1273_v4 = vpop.eup %1272 }
 0xe52   :  { %v792_v6 = vadd.f32 1.0, %v1273_v4 }
 0xe54   :  { %1274 = vrcp.f32 %v792_v6 }
 0xe61   :  { %v1275_v7 = vpop.eup %1274 }
 0xe62   :  { %v796_v8 = vmul.f32 %v1275_v7, %v701_v54 }
 0xec2   :  { %v799_v9 = vpop.permute.xlu1 %798 }
 0xec3   :  { %v801_v0 = vmul.f32 %v1275_v7, %v799_v9 }
 0xec5   :  { %803 = vrot.lane.b32.xlu0 %v801_v0, %s1297_s6 }
 0xf37   :  { %v804_v10 = vpop.permute.xlu0 %803 }
 0xf38   :  { %v806_v59 = vadd.f32 %v804_v10, %v796_v8 }
 0xf3a   :  { %1276 = vtanh.f32 %v806_v59 }
 0xf47   :  { %v1277_v12 = vpop.eup %1276 }
 0xf48   :  { %809 = vrot.lane.b32.xlu1 %v1277_v12, %s1296_s5 }
 0xfba   :  { %v810_v13 = vpop.permute.xlu1 %809 }
 0xfbb   :  { %v812_v14 = vmul.f32 %v1275_v7, %v810_v13 }
 0xfbd   :  { %814 = vrot.lane.b32.xlu0 %v812_v14, %s1297_s6 }
0x102f   :  { %v815_v15 = vpop.permute.xlu0 %814 }
0x1030   :  { %1064 = vst.msk [vmem:[%s1570_s4 + $0x28] sm:$0xff] %vm21_vm0, %v815_v15  ;;  %1212 = vmatmul.mubr.msk.f32.vlgmr.msra.gmra.mxu0 %vm21_vm0, %v815_v15 }
0x10f0   :  { %v889_v17 = vpop.f32.mrf.mxu0 }
0x10f1   :  { %v893_v18 = vadd.f32 %v889_v17, %v163_v16 }
0x10f2   :  { %v1213_v19 = vpop.f32.mrf.mxu0 }
0x10f3   :  { %1278 = vtanh.f32 %v893_v18  ;;  %v1066_v21 = vmul.f32 -1.442695, %v893_v18 }
0x10f5   :  { %1280 = vpow2.f32 %v1066_v21 }
0x1100   :  { %v1279_v20 = vpop.eup %1278 }
0x1101   :  { %903 = vrot.lane.b32.xlu1 %v1279_v20, %s1296_s5 }
0x1102   :  { %v1281_v22 = vpop.eup %1280 }
0x1103   :  { %v897_v23 = vadd.f32 1.0, %v1281_v22 }
0x1105   :  { %1282 = vrcp.f32 %v897_v23 }
0x1112   :  { %v1283_v24 = vpop.eup %1282 }
0x1113   :  { %v901_v27 = vmul.f32 %v1283_v24, %v806_v59 }
0x1173   :  { %v904_v25 = vpop.permute.xlu1 %903 }
0x1174   :  { %v906_v26 = vmul.f32 %v1283_v24, %v904_v25 }
0x1176   :  { %908 = vrot.lane.b32.xlu0 %v906_v26, %s1297_s6 }
0x11e8   :  { %v909_v28 = vpop.permute.xlu0 %908 }
0x11e9   :  { %v911_v62 = vadd.f32 %v909_v28, %v901_v27 }
0x11eb   :  { %1284 = vtanh.f32 %v911_v62 }
0x11f8   :  { %v1285_v29 = vpop.eup %1284 }
0x11f9   :  { %914 = vrot.lane.b32.xlu1 %v1285_v29, %s1296_s5 }
0x126b   :  { %v915_v30 = vpop.permute.xlu1 %914 }
0x126c   :  { %v917_v31 = vmul.f32 %v1283_v24, %v915_v30 }
0x126e   :  { %919 = vrot.lane.b32.xlu0 %v917_v31, %s1297_s6 }
0x12e0   :  { %v920_v32 = vpop.permute.xlu0 %919 }
0x12e1   :  { %1067 = vst.msk [vmem:[%s1570_s4 + $0x30] sm:$0xff] %vm21_vm0, %v920_v32  ;;  %1223 = vmatmul.mubr.msk.f32.vlgmr.msra.gmra.mxu1 %vm21_vm0, %v920_v32 }
0x13a1   :  { %v994_v34 = vpop.f32.mrf.mxu1 }
0x13a2   :  { %v998_v35 = vadd.f32 %v994_v34, %v168_v33 }
0x13a3   :  { %v1224_v36 = vpop.f32.mrf.mxu1 }
0x13a4   :  { %1286 = vtanh.f32 %v998_v35  ;;  %v1069_v38 = vmul.f32 -1.442695, %v998_v35 }
0x13a6   :  { %1288 = vpow2.f32 %v1069_v38 }
0x13b1   :  { %v1287_v37 = vpop.eup %1286 }
0x13b2   :  { %1008 = vrot.lane.b32.xlu1 %v1287_v37, %s1296_s5 }
0x13b3   :  { %v1289_v39 = vpop.eup %1288 }
0x13b4   :  { %v1002_v40 = vadd.f32 1.0, %v1289_v39 }
0x13b6   :  { %1290 = vrcp.f32 %v1002_v40 }
0x13c3   :  { %v1291_v41 = vpop.eup %1290 }
0x13c4   :  { %v1006_v44 = vmul.f32 %v1291_v41, %v911_v62 }
0x1424   :  { %v1009_v42 = vpop.permute.xlu1 %1008 }
0x1425   :  { %v1011_v43 = vmul.f32 %v1291_v41, %v1009_v42 }
0x1427   :  { %1013 = vrot.lane.b32.xlu0 %v1011_v43, %s1297_s6 }
0x1499   :  { %v1014_v45 = vpop.permute.xlu0 %1013 }
0x149a   :  { %v1016_v11 = vadd.f32 %v1014_v45, %v1006_v44 }
0x149c   :  { %1292 = vtanh.f32 %v1016_v11 }
0x14a9   :  { %v1293_v61 = vpop.eup %1292 }
0x14aa   :  { %1019 = vrot.lane.b32.xlu1 %v1293_v61, %s1296_s5 }
0x14ae   :  { %1031 = vrot.lane.b32.xlu1 %v1016_v11, %s1298_s2 }
0x151c   :  { %v1020_v46 = vpop.permute.xlu1 %1019 }
0x151d   :  { %v1022_v47 = vmul.f32 %v1291_v41, %v1020_v46 }
0x151f   :  { %1024 = vrot.lane.b32.xlu0 %v1022_v47, %s1297_s6 }
0x1520   :  { %v1032_v48 = vpop.permute.xlu1 %1031 }
0x1521   :  { %1034 = vst.msk [vmem:[#allocation3] sm:$0xff] %vm21_vm0, %v1032_v48 }
0x1591   :  { %v1025_v49 = vpop.permute.xlu0 %1024 }
0x1592   :  { %1070 = vst.msk [vmem:[%s1570_s4 + $0x38] sm:$0xff] %vm21_vm0, %v1025_v49  ;;  %1029 = vst.msk [vmem:[#allocation2] sm:$0xff] %vm21_vm0, %v1025_v49 }

</bundles_post_ra>
